<compile_context>
chip_gen: v7x
topology: tpu7x:2x2x1
jax: 0.10.0
libtpu: 0.0.40
codegen_flags: <defaults>
</compile_context>

<pallas_src>
import jax
import jax.numpy as jnp
from jax.experimental import pallas as pl
from jax.experimental.pallas import tpu as pltpu


def _round_up(x, m):
    return (x + m - 1) // m * m


# ----------------------------- Pallas kernel ------------------------------ #

def aux_head_kernel(x_ref, w1_ref, b1_ref, w2_ref, b2_ref, wc_ref, bc_ref,
                    out_ref):
    # x_ref: (TN, C*64) bf16; column index = c*64 + h*8 + w (free NCHW flatten).
    x = jnp.maximum(x_ref[...], 0)          # ReLU (exact through the bf16 cast)

    # Fused ReLU->AvgPool(5,s3)->Conv1x1->BN1 scale: one matmul, f32 accumulate.
    # Result columns: p*128 + oc, p = oh*2 + ow over the 2x2 pooled grid.
    h = jnp.dot(x, w1_ref[...], preferred_element_type=jnp.float32)   # (TN, 512)
    h = jnp.maximum(h + b1_ref[...], 0.0)                             # BN1 shift + ReLU

    # Conv2d(128,768,2) over the 2x2 pooled grid == single (512,768) matmul
    # (BN2 scale folded into w2), then BN2 shift + ReLU.
    y = jnp.dot(h.astype(jnp.bfloat16), w2_ref[...],
                preferred_element_type=jnp.float32)                   # (TN, 768)
    y = jnp.maximum(y + b2_ref[...], 0.0)

    # Linear(768, num_classes) padded to a 128-lane-dense output block.
    out_ref[...] = (jnp.dot(y.astype(jnp.bfloat16), wc_ref[...],
                            preferred_element_type=jnp.float32) + bc_ref[...])


# ------------------------------- Wrapper ---------------------------------- #

def auxiliary_head_cifar(x_nchw, params, *, num_classes, tile_n=128):
    """x_nchw: (N, C, 8, 8) float32 (PyTorch layout). Returns (N, num_classes) f32."""
    N, C, H, W = x_nchw.shape
    assert H == 8 and W == 8, "AuxiliaryHeadCIFAR assumes 8x8 spatial input"

    TN = min(tile_n, _round_up(max(N, 1), 16))      # bf16 sublane-friendly tile
    N_pad = _round_up(N, TN)
    NC_PAD = _round_up(num_classes, 128)

    # Free (contiguous) flatten of NCHW -> (N, C*64); no transpose pass in HBM.
    x_flat = x_nchw.reshape(N, C * 64).astype(jnp.bfloat16)
    if N_pad != N:
        x_flat = jnp.pad(x_flat, ((0, N_pad - N), (0, 0)))

    w1, b1 = params["w1_big"], params["b1_full"]
    w2, b2 = params["w2"], params["b2"]
    wc, bc = params["wc_pad"], params["bc_pad"]

    out = pl.pallas_call(
        aux_head_kernel,
        out_shape=jax.ShapeDtypeStruct((N_pad, NC_PAD), jnp.float32),
        grid_spec=pltpu.PrefetchScalarGridSpec(
            num_scalar_prefetch=0,
            grid=(N_pad // TN,),
            in_specs=[
                pl.BlockSpec((TN, C * 64), lambda i: (i, 0)),   # x tile (pipelined)
                pl.BlockSpec(w1.shape, lambda i: (0, 0)),       # weights stay resident
                pl.BlockSpec(b1.shape, lambda i: (0, 0)),
                pl.BlockSpec(w2.shape, lambda i: (0, 0)),
                pl.BlockSpec(b2.shape, lambda i: (0, 0)),
                pl.BlockSpec(wc.shape, lambda i: (0, 0)),
                pl.BlockSpec(bc.shape, lambda i: (0, 0)),
            ],
            out_specs=pl.BlockSpec((TN, NC_PAD), lambda i: (i, 0)),
        ),
        compiler_params=pltpu.CompilerParams(
            dimension_semantics=("parallel",),            # megacore shard on v7x
            vmem_limit_bytes=32 * 1024 * 1024,            # explicit scoped VMEM
        ),
    )(x_flat, w1, b1, w2, b2, wc, bc)

    return out[:N, :num_classes]


# ----------------------- Parameters (raw + folded) ------------------------- #

def make_params(C, num_classes, key):
    """Deterministic synthetic module parameters (shapes from __init__)."""
    ks = jax.random.split(key, 8)
    # Conv2d(C,128,1,bias=False): torch weight (128,C,1,1) stored transposed (C,128)
    w1 = 0.1 * jax.random.normal(ks[0], (C, 128), jnp.float32)
    g1 = 1.0 + 0.1 * jax.random.normal(ks[1], (128,), jnp.float32)
    be1 = 0.1 * jax.random.normal(ks[2], (128,), jnp.float32)
    # Conv2d(128,768,2,bias=False): torch (768,128,2,2) stored as (kh,kw,ic,oc)->(512,768)
    w2 = 0.05 * jax.random.normal(ks[3], (2, 2, 128, 768), jnp.float32).reshape(512, 768)
    g2 = 1.0 + 0.1 * jax.random.normal(ks[4], (768,), jnp.float32)
    be2 = 0.1 * jax.random.normal(ks[5], (768,), jnp.float32)
    # Linear(768, num_classes): torch (nc,768) stored transposed (768,nc)
    wc = 0.05 * jax.random.normal(ks[6], (768, num_classes), jnp.float32)
    bc = 0.1 * jax.random.normal(ks[7], (num_classes,), jnp.float32)
    return dict(w1=w1, gamma1=g1, beta1=be1, w2=w2, gamma2=g2, beta2=be2,
                wc=wc, bc=bc)


def fold_params(raw, C, num_classes, eps=1e-5):
    """Fold eval-mode BN (running_mean=0, running_var=1) + 1/25 pool scale into the
    weights, and expand conv1 into the fused ReLU->AvgPool->Conv matmul weight."""
    s1 = raw["gamma1"] / jnp.sqrt(1.0 + eps)
    s2 = raw["gamma2"] / jnp.sqrt(1.0 + eps)

    w1s = raw["w1"] * s1[None, :] / 25.0                       # (C,128): BN1 + 1/25

    # Window-membership mask for AvgPool2d(5, stride=3) on 8x8 -> 2x2.
    # All windows are fully inside, so count_include_pad=False is moot.
    hw = jnp.arange(64)
    hh, ww = hw // 8, hw % 8
    cols = []
    for oh in range(2):
        for ow in range(2):
            cols.append(((hh >= 3 * oh) & (hh < 3 * oh + 5) &
                         (ww >= 3 * ow) & (ww < 3 * ow + 5)).astype(jnp.float32))
    mask = jnp.stack(cols, axis=1)                             # (64, 4)

    # w1_big[c*64 + h*8 + w, p*128 + oc] = mask[h*8+w, p] * w1[c,oc]*s1[oc]/25
    w1_big = (mask[None, :, :, None] * w1s[:, None, None, :]).reshape(C * 64, 4 * 128)

    NC_PAD = _round_up(num_classes, 128)
    wc_pad = jnp.zeros((768, NC_PAD), jnp.float32).at[:, :num_classes].set(raw["wc"])
    bc_pad = jnp.zeros((1, NC_PAD), jnp.float32).at[0, :num_classes].set(raw["bc"])

    return dict(
        w1_big=w1_big.astype(jnp.bfloat16),                    # (C*64, 512)
        b1_full=jnp.tile(raw["beta1"][None, :], (1, 4)),       # (1, 512) f32
        w2=(raw["w2"] * s2[None, :]).astype(jnp.bfloat16),     # (512, 768)
        b2=raw["beta2"][None, :],                              # (1, 768) f32
        wc_pad=wc_pad.astype(jnp.bfloat16),                    # (768, NC_PAD)
        bc_pad=bc_pad,                                         # (1, NC_PAD) f32
    )


# ------------------------- Pure-JAX reference ------------------------------ #

def reference_forward(x, raw, eps=1e-5):
    r = jnp.maximum(x, 0.0)                                    # (N,C,8,8)
    pooled = jnp.stack(
        [jnp.stack([jnp.mean(r[:, :, 3 * oh:3 * oh + 5, 3 * ow:3 * ow + 5],
                             axis=(2, 3)) for ow in range(2)], axis=-1)
         for oh in range(2)], axis=-2)                         # (N,C,2,2)
    s1 = raw["gamma1"] / jnp.sqrt(1.0 + eps)
    s2 = raw["gamma2"] / jnp.sqrt(1.0 + eps)
    c1 = jnp.einsum("nchw,ck->nkhw", pooled, raw["w1"])        # (N,128,2,2)
    h = jnp.maximum(c1 * s1[None, :, None, None] + raw["beta1"][None, :, None, None], 0.0)
    w2 = raw["w2"].reshape(2, 2, 128, 768)                     # (kh,kw,ic,oc)
    c2 = jnp.einsum("nihw,hwio->no", h, w2)                    # (N,768)
    y = jnp.maximum(c2 * s2[None, :] + raw["beta2"][None, :], 0.0)
    return y @ raw["wc"] + raw["bc"][None, :]


# --------------------------------- Main ------------------------------------ #

if __name__ == "__main__":
    key = jax.random.PRNGKey(0)
    kx, kp = jax.random.split(key)

    N, C, num_classes = 2, 4, 10          # small shapes; spatial must be 8x8
    x = jax.random.normal(kx, (N, C, 8, 8), jnp.float32)
    raw = make_params(C, num_classes, kp)
    params = fold_params(raw, C, num_classes)

    out = auxiliary_head_cifar(x, params, num_classes=num_classes)
    out = jax.block_until_ready(out)

    assert out.shape == (N, num_classes), out.shape
    assert out.dtype == jnp.float32
    assert bool(jnp.all(jnp.isfinite(out)))

    ref = reference_forward(x, raw)
    # bf16 weights/activations with f32 accumulation -> loose tolerance.
    assert bool(jnp.allclose(out, ref, rtol=5e-2, atol=1e-1)), (
        float(jnp.max(jnp.abs(out - ref))))

    print("KERNEL_OK")
</pallas_src>

<mosaic_0001>
module attributes {stable_mosaic.version = 11 : i64} {
  func.func @aux_head_kernel(%arg0: i32, %arg1: memref<16x256xbf16, #tpu.memory_space<vmem>>, %arg2: memref<256x512xbf16, #tpu.memory_space<vmem>>, %arg3: memref<1x512xf32, #tpu.memory_space<vmem>>, %arg4: memref<512x768xbf16, #tpu.memory_space<vmem>>, %arg5: memref<1x768xf32, #tpu.memory_space<vmem>>, %arg6: memref<768x128xbf16, #tpu.memory_space<vmem>>, %arg7: memref<1x128xf32, #tpu.memory_space<vmem>>, %arg8: memref<16x128xf32, #tpu.memory_space<vmem>>) attributes {dimension_semantics = [#tpu.dimension_semantics<parallel>], iteration_bounds = array<i64: 1>, scalar_prefetch = 0 : i64, scratch_operands = 0 : i64, tpu.core_type = #tpu.core_type<tc>, window_params = [{transform_indices = @transform_0, window_bounds = array<i64: 16, 256>}, {pipeline_mode = #tpu.pipeline_mode<synchronous>, transform_indices = @transform_1, window_bounds = array<i64: 256, 512>}, {pipeline_mode = #tpu.pipeline_mode<synchronous>, transform_indices = @transform_2, window_bounds = array<i64: 1, 512>}, {pipeline_mode = #tpu.pipeline_mode<synchronous>, transform_indices = @transform_3, window_bounds = array<i64: 512, 768>}, {pipeline_mode = #tpu.pipeline_mode<synchronous>, transform_indices = @transform_4, window_bounds = array<i64: 1, 768>}, {pipeline_mode = #tpu.pipeline_mode<synchronous>, transform_indices = @transform_5, window_bounds = array<i64: 768, 128>}, {pipeline_mode = #tpu.pipeline_mode<synchronous>, transform_indices = @transform_6, window_bounds = array<i64: 1, 128>}, {transform_indices = @transform_7, window_bounds = array<i64: 16, 128>}]} {
    %c0 = arith.constant 0 : index
    %c0_0 = arith.constant 0 : index
    %0 = vector.load %arg1[%c0, %c0_0] : memref<16x256xbf16, #tpu.memory_space<vmem>>, vector<16x256xbf16>
    %cst = arith.constant 0.000000e+00 : bf16
    %1 = vector.broadcast %cst : bf16 to vector<16x256xbf16>
    %2 = arith.maximumf %0, %1 : vector<16x256xbf16>
    %c0_1 = arith.constant 0 : index
    %c0_2 = arith.constant 0 : index
    %3 = vector.load %arg2[%c0_1, %c0_2] : memref<256x512xbf16, #tpu.memory_space<vmem>>, vector<256x512xbf16>
    %cst_3 = arith.constant dense<0.000000e+00> : vector<16x512xf32>
    %4 = tpu.matmul %2, %3, %cst_3 {dimension_numbers = #tpu.dot_dimension_numbers<[1], [0], [0], [1], [0, 0, 1, 1], [], []>} : vector<16x256xbf16>, vector<256x512xbf16>, vector<16x512xf32> -> vector<16x512xf32>
    %c0_4 = arith.constant 0 : index
    %c0_5 = arith.constant 0 : index
    %5 = vector.load %arg3[%c0_4, %c0_5] : memref<1x512xf32, #tpu.memory_space<vmem>>, vector<1x512xf32>
    %6 = vector.broadcast %5 : vector<1x512xf32> to vector<16x512xf32>
    %7 = arith.addf %4, %6 : vector<16x512xf32>
    %cst_6 = arith.constant 0.000000e+00 : f32
    %8 = vector.broadcast %cst_6 : f32 to vector<16x512xf32>
    %9 = arith.maximumf %7, %8 : vector<16x512xf32>
    %10 = arith.truncf %9 : vector<16x512xf32> to vector<16x512xbf16>
    %c0_7 = arith.constant 0 : index
    %c0_8 = arith.constant 0 : index
    %11 = vector.load %arg4[%c0_7, %c0_8] : memref<512x768xbf16, #tpu.memory_space<vmem>>, vector<512x768xbf16>
    %cst_9 = arith.constant dense<0.000000e+00> : vector<16x768xf32>
    %12 = tpu.matmul %10, %11, %cst_9 {dimension_numbers = #tpu.dot_dimension_numbers<[1], [0], [0], [1], [0, 0, 1, 1], [], []>} : vector<16x512xbf16>, vector<512x768xbf16>, vector<16x768xf32> -> vector<16x768xf32>
    %c0_10 = arith.constant 0 : index
    %c0_11 = arith.constant 0 : index
    %13 = vector.load %arg5[%c0_10, %c0_11] : memref<1x768xf32, #tpu.memory_space<vmem>>, vector<1x768xf32>
    %14 = vector.broadcast %13 : vector<1x768xf32> to vector<16x768xf32>
    %15 = arith.addf %12, %14 : vector<16x768xf32>
    %cst_12 = arith.constant 0.000000e+00 : f32
    %16 = vector.broadcast %cst_12 : f32 to vector<16x768xf32>
    %17 = arith.maximumf %15, %16 : vector<16x768xf32>
    %18 = arith.truncf %17 : vector<16x768xf32> to vector<16x768xbf16>
    %c0_13 = arith.constant 0 : index
    %c0_14 = arith.constant 0 : index
    %19 = vector.load %arg6[%c0_13, %c0_14] : memref<768x128xbf16, #tpu.memory_space<vmem>>, vector<768x128xbf16>
    %cst_15 = arith.constant dense<0.000000e+00> : vector<16x128xf32>
    %20 = tpu.matmul %18, %19, %cst_15 {dimension_numbers = #tpu.dot_dimension_numbers<[1], [0], [0], [1], [0, 0, 1, 1], [], []>} : vector<16x768xbf16>, vector<768x128xbf16>, vector<16x128xf32> -> vector<16x128xf32>
    %c0_16 = arith.constant 0 : index
    %c0_17 = arith.constant 0 : index
    %21 = vector.load %arg7[%c0_16, %c0_17] : memref<1x128xf32, #tpu.memory_space<vmem>>, vector<1x128xf32>
    %22 = vector.broadcast %21 : vector<1x128xf32> to vector<16x128xf32>
    %23 = arith.addf %20, %22 : vector<16x128xf32>
    %c0_18 = arith.constant 0 : index
    %c0_19 = arith.constant 0 : index
    %24 = vector.load %arg8[%c0_18, %c0_19] : memref<16x128xf32, #tpu.memory_space<vmem>>, vector<16x128xf32>
    tpu.vector_store %arg8[%c0_18, %c0_19], %23 {strides = array<i32>} : memref<16x128xf32, #tpu.memory_space<vmem>>, vector<16x128xf32>,
    return
  }
  func.func @transform_0(%arg0: i32) -> (i32, i32) {
    %c0_i32 = arith.constant 0 : i32
    %c0_i32_0 = arith.constant 0 : i32
    return %arg0, %c0_i32 : i32, i32
  }
  func.func @transform_1(%arg0: i32) -> (i32, i32) {
    %c0_i32 = arith.constant 0 : i32
    %c0_i32_0 = arith.constant 0 : i32
    %c0_i32_1 = arith.constant 0 : i32
    return %c0_i32, %c0_i32_0 : i32, i32
  }
  func.func @transform_2(%arg0: i32) -> (i32, i32) {
    %c0_i32 = arith.constant 0 : i32
    %c0_i32_0 = arith.constant 0 : i32
    %c0_i32_1 = arith.constant 0 : i32
    return %c0_i32, %c0_i32_0 : i32, i32
  }
  func.func @transform_3(%arg0: i32) -> (i32, i32) {
    %c0_i32 = arith.constant 0 : i32
    %c0_i32_0 = arith.constant 0 : i32
    %c0_i32_1 = arith.constant 0 : i32
    return %c0_i32, %c0_i32_0 : i32, i32
  }
  func.func @transform_4(%arg0: i32) -> (i32, i32) {
    %c0_i32 = arith.constant 0 : i32
    %c0_i32_0 = arith.constant 0 : i32
    %c0_i32_1 = arith.constant 0 : i32
    return %c0_i32, %c0_i32_0 : i32, i32
  }
  func.func @transform_5(%arg0: i32) -> (i32, i32) {
    %c0_i32 = arith.constant 0 : i32
    %c0_i32_0 = arith.constant 0 : i32
    %c0_i32_1 = arith.constant 0 : i32
    return %c0_i32, %c0_i32_0 : i32, i32
  }
  func.func @transform_6(%arg0: i32) -> (i32, i32) {
    %c0_i32 = arith.constant 0 : i32
    %c0_i32_0 = arith.constant 0 : i32
    %c0_i32_1 = arith.constant 0 : i32
    return %c0_i32, %c0_i32_0 : i32, i32
  }
  func.func @transform_7(%arg0: i32) -> (i32, i32) {
    %c0_i32 = arith.constant 0 : i32
    %c0_i32_0 = arith.constant 0 : i32
    return %arg0, %c0_i32 : i32, i32
  }
}

</mosaic_0001>

<bundles_post_ra>
// kernel: tpu_custom_call.1
= control target key start
LH: loop header
LB: loop body
LE: loop exit
PB: predicated region body
PF: predicated region fallthrough
CT: control target
= control target key end

     0   :  { %12 = vsyncpa [#allocation3], 0  ;;  %s3746_s0 = inlined_call_operand.hbm [shape: bf16[16,256], index: 0, kind: input, shape index: {}]   ;;  %s3747_s1 = inlined_call_operand.hbm [shape: bf16[256,512], index: 1, kind: input, shape index: {}]   ;;  %s3748_s2 = inlined_call_operand.vmem [shape: f32[1,512], index: 2, kind: input, shape index: {}]   ;;  %s3749_s3 = inlined_call_operand.hbm [shape: bf16[512,768], index: 3, kind: input, shape index: {}]   ;;  %s3750_s4 = inlined_call_operand.vmem [shape: f32[1,768], index: 4, kind: input, shape index: {}]   ;;  %s3751_s5 = inlined_call_operand.hbm [shape: bf16[768,128], index: 5, kind: input, shape index: {}]   ;;  %s3752_s6 = inlined_call_operand.vmem [shape: f32[1,128], index: 6, kind: input, shape index: {}]   ;;  %s3753_s7 = inlined_call_operand.hbm [shape: f32[16,128], index: 7, kind: output, shape index: {}]  }
   0x1   :  { %13 = vsyncpa [#allocation6], 0 }
   0x2   :  { %14 = vsyncpa [#allocation9], 0 }
   0x3   :  { %15 = vsyncpa [#allocation4], 0  ;;  %s3557_s24 = smov [#allocation5]   ;;  %s3439_s28 = scalar_lea.hbm %s3747_s1, 8192 }
   0x4   :  { %s33_s25 = sshll.u32 %s3557_s24, 4  ;;  %p3440_p0 = scmp.ne.s32.totalorder %s3747_s1, %s3439_s28  ;;  %s34_s25 = int_to_ptr.vmem [resolvable:$true] %s33_s25 }
   0x5   :  { %p3443_p1 = scmp.lt.u32.totalorder %s3439_s28, %s3747_s1 }
   0x7   :  { %p3445_p2 = pnand %p3443_p1, %p3440_p0 }
   0x9   :  { %3448 = shalt.err (!%p3445_p2)
}
   0xa   :  { %s3449_s10 = scalar_lea.vmem %s34_s25, 8192  ;;  %p3454_p4 = scmp.lt.s32.totalorder %s34_s25, %s34_s25 }
   0xb   :  { %p3450_p3 = scmp.ne.s32.totalorder %s34_s25, %s3449_s10  ;;  %p3455_p5 = scmp.lt.s32.totalorder %s3449_s10, %s3449_s10 }
   0xd   :  { %p3456_p6 = por %p3455_p5, %p3454_p4 }
   0xf   :  { %p3457_p7 = pnand %p3456_p6, %p3450_p3 }
  0x11   :  { %3460 = shalt.err (!%p3457_p7)
}
  0x12   :  { %s3558_s11 = smov 256   ;;  %s3559_s12 = smov 16  }
  0x13   :  { %39 = dma.hbm_to_vmem [thread:$0]  %s3747_s1, 8192, %s34_s25, [#allocation6], %s3558_s11, %s3558_s11, %s3559_s12  }
  0x14   :  { %s3560_s15 = smov [#allocation2]   ;;  %s3461_s19 = scalar_lea.hbm %s3746_s0, 256 }
  0x15   :  { %s21_s16 = sshll.u32 %s3560_s15, 4  ;;  %p3462_p8 = scmp.ne.s32.totalorder %s3746_s0, %s3461_s19  ;;  %s22_s16 = int_to_ptr.vmem [resolvable:$true] %s21_s16 }
  0x16   :  { %p3465_p9 = scmp.lt.u32.totalorder %s3461_s19, %s3746_s0 }
  0x18   :  { %p3467_p10 = pnand %p3465_p9, %p3462_p8 }
  0x1a   :  { %3470 = shalt.err (!%p3467_p10)
}
  0x1b   :  { %s3471_s24 = scalar_lea.vmem %s22_s16, 256  ;;  %p3476_p12 = scmp.lt.s32.totalorder %s22_s16, %s22_s16 }
  0x1c   :  { %p3472_p11 = scmp.ne.s32.totalorder %s22_s16, %s3471_s24  ;;  %p3477_p13 = scmp.lt.s32.totalorder %s3471_s24, %s3471_s24 }
  0x1e   :  { %p3478_p0 = por %p3477_p13, %p3476_p12 }
  0x20   :  { %p3479_p1 = pnand %p3478_p0, %p3472_p11 }
  0x22   :  { %3482 = shalt.err (!%p3479_p1)
}
  0x23   :  { %s3561_s1 = smov 128   ;;  %s3562_s25 = smov 8  }
  0x24   :  { %27 = dma.hbm_to_vmem [thread:$0]  %s3746_s0, 256, %s22_s16, [#allocation3], %s3561_s1, %s3561_s1, %s3562_s25  }
  0x25   :  { %s3563_s28 = smov [#allocation7]   ;;  %s3483_s9 = scalar_lea.hbm %s3749_s3, 24576 }
  0x26   :  { %s47_s29 = sshll.u32 %s3563_s28, 4  ;;  %p3484_p2 = scmp.ne.s32.totalorder %s3749_s3, %s3483_s9  ;;  %s48_s29 = int_to_ptr.vmem [resolvable:$true] %s47_s29 }
  0x27   :  { %p3487_p3 = scmp.lt.u32.totalorder %s3483_s9, %s3749_s3 }
  0x29   :  { %p3489_p4 = pnand %p3487_p3, %p3484_p2 }
  0x2b   :  { %3492 = shalt.err (!%p3489_p4)
}
  0x2c   :  { %s3493_s14 = scalar_lea.vmem %s48_s29, 24576  ;;  %p3498_p6 = scmp.lt.s32.totalorder %s48_s29, %s48_s29 }
  0x2d   :  { %p3494_p5 = scmp.ne.s32.totalorder %s48_s29, %s3493_s14  ;;  %p3499_p7 = scmp.lt.s32.totalorder %s3493_s14, %s3493_s14 }
  0x2f   :  { %p3500_p8 = por %p3499_p7, %p3498_p6 }
  0x31   :  { %p3501_p9 = pnand %p3500_p8, %p3494_p5 }
  0x33   :  { %3504 = shalt.err (!%p3501_p9)
}
  0x34   :  { %s3564_s0 = smov 384   ;;  %s3565_s15 = smov 24  }
  0x35   :  { %53 = dma.hbm_to_vmem [thread:$0]  %s3749_s3, 24576, %s48_s29, [#allocation6], %s3564_s0, %s3564_s0, %s3565_s15  }
  0x36   :  { %s3566_s18 = smov [#allocation8]   ;;  %s3505_s22 = scalar_lea.hbm %s3751_s5, 6144 }
  0x37   :  { %s61_s19 = sshll.u32 %s3566_s18, 4  ;;  %p3506_p10 = scmp.ne.s32.totalorder %s3751_s5, %s3505_s22  ;;  %s62_s19 = int_to_ptr.vmem [resolvable:$true] %s61_s19 }
  0x38   :  { %p3509_p11 = scmp.lt.u32.totalorder %s3505_s22, %s3751_s5 }
  0x3a   :  { %p3511_p12 = pnand %p3509_p11, %p3506_p10 }
  0x3c   :  { %3514 = shalt.err (!%p3511_p12)
}
  0x3d   :  { %s3515_s28 = scalar_lea.vmem %s62_s19, 6144  ;;  %p3520_p0 = scmp.lt.s32.totalorder %s62_s19, %s62_s19 }
  0x3e   :  { %p3516_p13 = scmp.ne.s32.totalorder %s62_s19, %s3515_s28  ;;  %p3521_p1 = scmp.lt.s32.totalorder %s3515_s28, %s3515_s28 }
  0x40   :  { %p3522_p2 = por %p3521_p1, %p3520_p0 }
  0x42   :  { %p3523_p3 = pnand %p3522_p2, %p3516_p13 }
  0x44   :  { %3526 = shalt.err (!%p3523_p3)
}
  0x45   :  { %s3567_s3 = smov 64   ;;  %s3568_s29 = smov 4  }
  0x46   :  { %67 = dma.hbm_to_vmem [thread:$0]  %s3751_s5, 6144, %s62_s19, [#allocation9], %s3567_s3, %s3567_s3, %s3568_s29  }
  0x47   :  { %3549 = dma.done.wait [#allocation3], 256  }
  0x48   :  { %3550 = vsyncadd [#allocation3], 4294967040 }
  0x49   :  { %3551 = dma.done.wait [#allocation6], 32768  }
  0x4a   :  { %3552 = vsyncadd [#allocation6], 4294934528 }
  0x4b   :  { %3553 = dma.done.wait [#allocation9], 6144  }
  0x4c   :  { %3554 = vsyncadd [#allocation9], 4294961152  ;;  %v3007_v0 = vld [vmem:[#allocation5 + $0x4] ss:$16 sps:$4 sm:$0xff]   ;;  %v3009_v1 = vld [vmem:[#allocation5] ss:$16 sps:$4 sm:$0xff]  }
  0x4d   :  { %503 = vmatprep.subr.bf16.mxu0 %v3007_v0  ;;  %v3010_v2 = vld [vmem:[#allocation5 + $0x24] ss:$16 sps:$4 sm:$0xff]   ;;  %v3012_v3 = vld [vmem:[#allocation5 + $0x20] ss:$16 sps:$4 sm:$0xff]   ;;  %v3055_v14 = vld [vmem:[#allocation5 + $0xc] ss:$16 sps:$4 sm:$0xff]  }
  0x4e   :  { %504 = vmatpush1.bf16.msra.mxu0 %v3009_v1  ;;  %v3013_v4 = vld [vmem:[#allocation5 + $0x44] ss:$16 sps:$4 sm:$0xff]   ;;  %v3015_v5 = vld [vmem:[#allocation5 + $0x40] ss:$16 sps:$4 sm:$0xff]   ;;  %v3057_v15 = vld [vmem:[#allocation5 + $0x8] ss:$16 sps:$4 sm:$0xff]   ;;  %546 = vmatprep.subr.bf16.mxu1 %v3055_v14 }
  0x4f   :  { %505 = vmatprep.subr.bf16.mxu0 %v3010_v2  ;;  %v3016_v6 = vld [vmem:[#allocation5 + $0x64] ss:$16 sps:$4 sm:$0xff]   ;;  %v3018_v7 = vld [vmem:[#allocation5 + $0x60] ss:$16 sps:$4 sm:$0xff]   ;;  %v84_v17 = vld [vmem:[#allocation2 + $0x8] sm:$0xff]  ;;  %v3569_v18 = vmov 0   ;;  %547 = vmatpush1.bf16.msra.mxu1 %v3057_v15 }
  0x50   :  { %v3019_v8 = vld [vmem:[#allocation5 + $0x84] ss:$16 sps:$4 sm:$0xff]   ;;  %v3021_v9 = vld [vmem:[#allocation5 + $0x80] ss:$16 sps:$4 sm:$0xff]   ;;  %v3664_v21 = vmax.bf16 %v3569_v18, %v84_v17  ;;  %v3058_v22 = vld [vmem:[#allocation5 + $0x2c] ss:$16 sps:$4 sm:$0xff]  }
  0x51   :  { %v3022_v10 = vld [vmem:[#allocation5 + $0xa4] ss:$16 sps:$4 sm:$0xff]   ;;  %v3024_v11 = vld [vmem:[#allocation5 + $0xa0] ss:$16 sps:$4 sm:$0xff]   ;;  %v3060_v23 = vld [vmem:[#allocation5 + $0x28] ss:$16 sps:$4 sm:$0xff]   ;;  %548 = vmatprep.subr.bf16.mxu1 %v3058_v22 }
  0x52   :  { %506 = vmatpush1.bf16.msra.mxu0 %v3012_v3  ;;  %v3025_v12 = vld [vmem:[#allocation5 + $0xc4] ss:$16 sps:$4 sm:$0xff]   ;;  %v3027_v13 = vld [vmem:[#allocation5 + $0xc0] ss:$16 sps:$4 sm:$0xff]   ;;  %v3061_v25 = vld [vmem:[#allocation5 + $0x4c] ss:$16 sps:$4 sm:$0xff]  }
  0x53   :  { %507 = vmatprep.subr.bf16.mxu0 %v3013_v4  ;;  %v83_v16 = vld [vmem:[#allocation2] sm:$0xff]  ;;  %549 = vmatpush1.bf16.msra.mxu1 %v3060_v23  ;;  %v3063_v28 = vld [vmem:[#allocation5 + $0x48] ss:$16 sps:$4 sm:$0xff]   ;;  %v3064_v29 = vld [vmem:[#allocation5 + $0x6c] ss:$16 sps:$4 sm:$0xff]   ;;  %s3570_s12 = smov [#allocation10]  }
  0x54   :  { %v3662_v19 = vmax.bf16 %v3569_v18, %v83_v16  ;;  %v3028_v20 = vld [vmem:[#allocation5 + $0xe4] ss:$16 sps:$4 sm:$0xff]   ;;  %v3030_v26 = vld [vmem:[#allocation5 + $0xe0] ss:$16 sps:$4 sm:$0xff]   ;;  %550 = vmatprep.subr.bf16.mxu1 %v3061_v25  ;;  %v3066_v32 = vld [vmem:[#allocation5 + $0x68] ss:$16 sps:$4 sm:$0xff]  }
  0x55   :  { %v3031_v27 = vld [vmem:[#allocation5 + $0x104] ss:$16 sps:$4 sm:$0xff]   ;;  %v3033_v30 = vld [vmem:[#allocation5 + $0x100] ss:$16 sps:$4 sm:$0xff]   ;;  %v3067_v33 = vld [vmem:[#allocation5 + $0x8c] ss:$16 sps:$4 sm:$0xff]  }
  0x56   :  { %508 = vmatpush1.bf16.msra.mxu0 %v3015_v5  ;;  %v2597_v24 = vcombine.high %v3662_v19, %v3664_v21  ;;  %v3034_v31 = vld [vmem:[#allocation5 + $0x124] ss:$16 sps:$4 sm:$0xff]   ;;  %v3036_v34 = vld [vmem:[#allocation5 + $0x120] ss:$16 sps:$4 sm:$0xff]   ;;  %v3069_v36 = vld [vmem:[#allocation5 + $0x88] ss:$16 sps:$4 sm:$0xff]   ;;  %v2596_v61 = vcombine.low %v3662_v19, %v3664_v21 }
  0x57   :  { %509 = vmatprep.subr.bf16.mxu0 %v3016_v6  ;;  %551 = vmatpush1.bf16.msra.mxu1 %v3063_v28  ;;  %v3037_v35 = vld [vmem:[#allocation5 + $0x144] ss:$16 sps:$4 sm:$0xff]   ;;  %v3070_v37 = vld [vmem:[#allocation5 + $0xac] ss:$16 sps:$4 sm:$0xff]   ;;  %v3039_v38 = vld [vmem:[#allocation5 + $0x140] ss:$16 sps:$4 sm:$0xff]  }
  0x58   :  { %535 = vmatprep.mubr.bf16.mxu0 %v2597_v24  ;;  %578 = vmatprep.mubr.bf16.mxu1 %v2597_v24  ;;  %v3040_v39 = vld [vmem:[#allocation5 + $0x164] ss:$16 sps:$4 sm:$0xff]   ;;  %v3072_v40 = vld [vmem:[#allocation5 + $0xa8] ss:$16 sps:$4 sm:$0xff]   ;;  %v3073_v41 = vld [vmem:[#allocation5 + $0xcc] ss:$16 sps:$4 sm:$0xff]  }
  0x59   :  { %552 = vmatprep.subr.bf16.mxu1 %v3064_v29  ;;  %v3042_v42 = vld [vmem:[#allocation5 + $0x160] ss:$16 sps:$4 sm:$0xff]   ;;  %v3043_v43 = vld [vmem:[#allocation5 + $0x184] ss:$16 sps:$4 sm:$0xff]   ;;  %v3075_v44 = vld [vmem:[#allocation5 + $0xc8] ss:$16 sps:$4 sm:$0xff]  }
  0x5a   :  { %510 = vmatpush1.bf16.msra.mxu0 %v3018_v7  ;;  %v3076_v45 = vld [vmem:[#allocation5 + $0xec] ss:$16 sps:$4 sm:$0xff]   ;;  %v3045_v46 = vld [vmem:[#allocation5 + $0x180] ss:$16 sps:$4 sm:$0xff]   ;;  %v3046_v47 = vld [vmem:[#allocation5 + $0x1a4] ss:$16 sps:$4 sm:$0xff]  }
  0x5b   :  { %511 = vmatprep.subr.bf16.mxu0 %v3019_v8  ;;  %553 = vmatpush1.bf16.msra.mxu1 %v3066_v32  ;;  %v3078_v48 = vld [vmem:[#allocation5 + $0xe8] ss:$16 sps:$4 sm:$0xff]   ;;  %v3079_v49 = vld [vmem:[#allocation5 + $0x10c] ss:$16 sps:$4 sm:$0xff]   ;;  %v3048_v50 = vld [vmem:[#allocation5 + $0x1a0] ss:$16 sps:$4 sm:$0xff]  }
  0x5c   :  { %554 = vmatprep.subr.bf16.mxu1 %v3067_v33  ;;  %v3049_v51 = vld [vmem:[#allocation5 + $0x1c4] ss:$16 sps:$4 sm:$0xff]   ;;  %v3081_v52 = vld [vmem:[#allocation5 + $0x108] ss:$16 sps:$4 sm:$0xff]   ;;  %v3082_v53 = vld [vmem:[#allocation5 + $0x12c] ss:$16 sps:$4 sm:$0xff]  }
  0x5d   :  { %v3051_v54 = vld [vmem:[#allocation5 + $0x1c0] ss:$16 sps:$4 sm:$0xff]   ;;  %v3052_v55 = vld [vmem:[#allocation5 + $0x1e4] ss:$16 sps:$4 sm:$0xff]   ;;  %v3084_v56 = vld [vmem:[#allocation5 + $0x128] ss:$16 sps:$4 sm:$0xff]  }
  0x5e   :  { %512 = vmatpush1.bf16.msra.mxu0 %v3021_v9  ;;  %v3085_v57 = vld [vmem:[#allocation5 + $0x14c] ss:$16 sps:$4 sm:$0xff]   ;;  %v3054_v58 = vld [vmem:[#allocation5 + $0x1e0] ss:$16 sps:$4 sm:$0xff]   ;;  %v3087_v60 = vld [vmem:[#allocation5 + $0x148] ss:$16 sps:$4 sm:$0xff]  }
  0x5f   :  { %513 = vmatprep.subr.bf16.mxu0 %v3022_v10  ;;  %555 = vmatpush1.bf16.msra.mxu1 %v3069_v36  ;;  %v3105_v59 = vld [vmem:[#allocation7 + $0x4] ss:$24 sps:$4 sm:$0xff]   ;;  %v3103_v63 = vld [vmem:[#allocation7] ss:$24 sps:$4 sm:$0xff]   ;;  %v3111_v0 = vld [vmem:[#allocation7 + $0x34] ss:$24 sps:$4 sm:$0xff]  }
  0x60   :  { %556 = vmatprep.subr.bf16.mxu1 %v3070_v37  ;;  %v3088_v62 = vld [vmem:[#allocation5 + $0x16c] ss:$16 sps:$4 sm:$0xff]   ;;  %v3090_v1 = vld [vmem:[#allocation5 + $0x168] ss:$16 sps:$4 sm:$0xff]   ;;  %s2582_s13 = sshll.u32 %s3570_s12, 4  ;;  %s2583_s13 = int_to_ptr.vmem [resolvable:$true] %s2582_s13 }
  0x61   :  { %v3091_v2 = vld [vmem:[#allocation5 + $0x18c] ss:$16 sps:$4 sm:$0xff]   ;;  %v3109_v3 = vld [vmem:[#allocation7 + $0x30] ss:$24 sps:$4 sm:$0xff]   ;;  %v3115_v7 = vld [vmem:[#allocation7 + $0x60] ss:$24 sps:$4 sm:$0xff]   ;;  %p3532_p5 = scmp.lt.s32.totalorder %s2583_s13, %s2583_s13 }
  0x62   :  { %514 = vmatpush1.bf16.msra.mxu0 %v3024_v11  ;;  %v3117_v4 = vld [vmem:[#allocation7 + $0x64] ss:$24 sps:$4 sm:$0xff]   ;;  %v3093_v5 = vld [vmem:[#allocation5 + $0x188] ss:$16 sps:$4 sm:$0xff]   ;;  %v3123_v8 = vld [vmem:[#allocation7 + $0x94] ss:$24 sps:$4 sm:$0xff]  }
  0x63   :  { %515 = vmatprep.subr.bf16.mxu0 %v3025_v12  ;;  %557 = vmatpush1.bf16.msra.mxu1 %v3072_v40  ;;  %v3094_v6 = vld [vmem:[#allocation5 + $0x1ac] ss:$16 sps:$4 sm:$0xff]   ;;  %v3096_v9 = vld [vmem:[#allocation5 + $0x1a8] ss:$16 sps:$4 sm:$0xff]  }
  0x64   :  { %558 = vmatprep.subr.bf16.mxu1 %v3073_v41  ;;  %v3097_v10 = vld [vmem:[#allocation5 + $0x1cc] ss:$16 sps:$4 sm:$0xff]   ;;  %v3121_v11 = vld [vmem:[#allocation7 + $0x90] ss:$24 sps:$4 sm:$0xff]   ;;  %v3127_v15 = vld [vmem:[#allocation7 + $0xc0] ss:$24 sps:$4 sm:$0xff]  }
  0x65   :  { %v3129_v12 = vld [vmem:[#allocation7 + $0xc4] ss:$24 sps:$4 sm:$0xff]   ;;  %v3102_v16 = vld [vmem:[#allocation5 + $0x1e8] ss:$16 sps:$4 sm:$0xff]   ;;  %v3135_v18 = vld [vmem:[#allocation7 + $0xf4] ss:$24 sps:$4 sm:$0xff]  }
  0x66   :  { %516 = vmatpush1.bf16.msra.mxu0 %v3027_v13  ;;  %v3099_v13 = vld [vmem:[#allocation5 + $0x1c8] ss:$16 sps:$4 sm:$0xff]   ;;  %v3100_v14 = vld [vmem:[#allocation5 + $0x1ec] ss:$16 sps:$4 sm:$0xff]  }
  0x67   :  { %517 = vmatprep.subr.bf16.mxu0 %v3028_v20  ;;  %559 = vmatpush1.bf16.msra.mxu1 %v3075_v44  ;;  %v3108_v17 = vld [vmem:[#allocation7 + $0xc] ss:$24 sps:$4 sm:$0xff]   ;;  %v3133_v19 = vld [vmem:[#allocation7 + $0xf0] ss:$24 sps:$4 sm:$0xff]   ;;  %v3114_v22 = vld [vmem:[#allocation7 + $0x3c] ss:$24 sps:$4 sm:$0xff]  }
  0x68   :  { %560 = vmatprep.subr.bf16.mxu1 %v3076_v45  ;;  %v3141_v20 = vld [vmem:[#allocation7 + $0x124] ss:$24 sps:$4 sm:$0xff]   ;;  %v3106_v21 = vld [vmem:[#allocation7 + $0x8] ss:$24 sps:$4 sm:$0xff]   ;;  %v3147_v24 = vld [vmem:[#allocation7 + $0x154] ss:$24 sps:$4 sm:$0xff]  }
  0x69   :  { %v3139_v23 = vld [vmem:[#allocation7 + $0x120] ss:$24 sps:$4 sm:$0xff]   ;;  %v3153_v28 = vld [vmem:[#allocation7 + $0x184] ss:$24 sps:$4 sm:$0xff]   ;;  %v3159_v32 = vld [vmem:[#allocation7 + $0x1b4] ss:$24 sps:$4 sm:$0xff]  }
  0x6a   :  { %518 = vmatpush1.bf16.msra.mxu0 %v3030_v26  ;;  %v3112_v25 = vld [vmem:[#allocation7 + $0x38] ss:$24 sps:$4 sm:$0xff]   ;;  %v3120_v26 = vld [vmem:[#allocation7 + $0x6c] ss:$24 sps:$4 sm:$0xff]   ;;  %v3118_v29 = vld [vmem:[#allocation7 + $0x68] ss:$24 sps:$4 sm:$0xff]  }
  0x6b   :  { %519 = vmatprep.subr.bf16.mxu0 %v3031_v27  ;;  %561 = vmatpush1.bf16.msra.mxu1 %v3078_v48  ;;  %v3145_v27 = vld [vmem:[#allocation7 + $0x150] ss:$24 sps:$4 sm:$0xff]   ;;  %v3165_v36 = vld [vmem:[#allocation7 + $0x1e4] ss:$24 sps:$4 sm:$0xff]   ;;  %v3171_v40 = vld [vmem:[#allocation7 + $0x214] ss:$24 sps:$4 sm:$0xff]  }
  0x6c   :  { %562 = vmatprep.subr.bf16.mxu1 %v3079_v49  ;;  %v3124_v33 = vld [vmem:[#allocation7 + $0x98] ss:$24 sps:$4 sm:$0xff]   ;;  %v3130_v37 = vld [vmem:[#allocation7 + $0xc8] ss:$24 sps:$4 sm:$0xff]   ;;  %v3177_v44 = vld [vmem:[#allocation7 + $0x244] ss:$24 sps:$4 sm:$0xff]  }
  0x6d   :  { %v3136_v41 = vld [vmem:[#allocation7 + $0xf8] ss:$24 sps:$4 sm:$0xff]   ;;  %v3142_v45 = vld [vmem:[#allocation7 + $0x128] ss:$24 sps:$4 sm:$0xff]   ;;  %v3183_v48 = vld [vmem:[#allocation7 + $0x274] ss:$24 sps:$4 sm:$0xff]  }
  0x6e   :  { %520 = vmatpush1.bf16.msra.mxu0 %v3033_v30  ;;  %v3126_v30 = vld [vmem:[#allocation7 + $0x9c] ss:$24 sps:$4 sm:$0xff]   ;;  %v3148_v49 = vld [vmem:[#allocation7 + $0x158] ss:$24 sps:$4 sm:$0xff]  }
  0x6f   :  { %521 = vmatprep.subr.bf16.mxu0 %v3034_v31  ;;  %563 = vmatpush1.bf16.msra.mxu1 %v3081_v52  ;;  %v3151_v31 = vld [vmem:[#allocation7 + $0x180] ss:$24 sps:$4 sm:$0xff]  }
  0x70   :  { %564 = vmatprep.subr.bf16.mxu1 %v3082_v53  ;;  %v3154_v52 = vld [vmem:[#allocation7 + $0x188] ss:$24 sps:$4 sm:$0xff]   ;;  %v3162_v53 = vld [vmem:[#allocation7 + $0x1bc] ss:$24 sps:$4 sm:$0xff]  }
  0x72   :  { %522 = vmatpush1.bf16.msra.mxu0 %v3036_v34  ;;  %v3132_v34 = vld [vmem:[#allocation7 + $0xcc] ss:$24 sps:$4 sm:$0xff]  }
  0x73   :  { %523 = vmatprep.subr.bf16.mxu0 %v3037_v35  ;;  %565 = vmatpush1.bf16.msra.mxu1 %v3084_v56  ;;  %v3157_v35 = vld [vmem:[#allocation7 + $0x1b0] ss:$24 sps:$4 sm:$0xff]  }
  0x74   :  { %566 = vmatprep.subr.bf16.mxu1 %v3085_v57  ;;  %v3166_v56 = vld [vmem:[#allocation7 + $0x1e8] ss:$24 sps:$4 sm:$0xff]   ;;  %v3174_v57 = vld [vmem:[#allocation7 + $0x21c] ss:$24 sps:$4 sm:$0xff]  }
  0x76   :  { %524 = vmatpush1.bf16.msra.mxu0 %v3039_v38  ;;  %v3138_v38 = vld [vmem:[#allocation7 + $0xfc] ss:$24 sps:$4 sm:$0xff]  }
  0x77   :  { %525 = vmatprep.subr.bf16.mxu0 %v3040_v39  ;;  %567 = vmatpush1.bf16.msra.mxu1 %v3087_v60  ;;  %v3163_v39 = vld [vmem:[#allocation7 + $0x1e0] ss:$24 sps:$4 sm:$0xff]  }
  0x78   :  { %568 = vmatprep.subr.bf16.mxu1 %v3088_v62  ;;  %v3178_v60 = vld [vmem:[#allocation7 + $0x248] ss:$24 sps:$4 sm:$0xff]   ;;  %v3184_v62 = vld [vmem:[#allocation7 + $0x278] ss:$24 sps:$4 sm:$0xff]  }
  0x7a   :  { %526 = vmatpush1.bf16.msra.mxu0 %v3042_v42  ;;  %v3144_v42 = vld [vmem:[#allocation7 + $0x12c] ss:$24 sps:$4 sm:$0xff]  }
  0x7b   :  { %527 = vmatprep.subr.bf16.mxu0 %v3043_v43  ;;  %569 = vmatpush1.bf16.msra.mxu1 %v3090_v1  ;;  %v3169_v43 = vld [vmem:[#allocation7 + $0x210] ss:$24 sps:$4 sm:$0xff]   ;;  %v3187_v1 = vld [vmem:[#allocation7 + $0x2a0] ss:$24 sps:$4 sm:$0xff]  }
  0x7c   :  { %570 = vmatprep.subr.bf16.mxu1 %v3091_v2  ;;  %v3190_v2 = vld [vmem:[#allocation7 + $0x2a8] ss:$24 sps:$4 sm:$0xff]  }
  0x7e   :  { %528 = vmatpush1.bf16.msra.mxu0 %v3045_v46  ;;  %v3150_v46 = vld [vmem:[#allocation7 + $0x15c] ss:$24 sps:$4 sm:$0xff]  }
  0x7f   :  { %529 = vmatprep.subr.bf16.mxu0 %v3046_v47  ;;  %571 = vmatpush1.bf16.msra.mxu1 %v3093_v5  ;;  %v3175_v47 = vld [vmem:[#allocation7 + $0x240] ss:$24 sps:$4 sm:$0xff]   ;;  %v3193_v5 = vld [vmem:[#allocation7 + $0x2d0] ss:$24 sps:$4 sm:$0xff]  }
  0x80   :  { %572 = vmatprep.subr.bf16.mxu1 %v3094_v6  ;;  %v3196_v6 = vld [vmem:[#allocation7 + $0x2d8] ss:$24 sps:$4 sm:$0xff]  }
  0x82   :  { %530 = vmatpush1.bf16.msra.mxu0 %v3048_v50  ;;  %v3156_v50 = vld [vmem:[#allocation7 + $0x18c] ss:$24 sps:$4 sm:$0xff]  }
  0x83   :  { %531 = vmatprep.subr.bf16.mxu0 %v3049_v51  ;;  %573 = vmatpush1.bf16.msra.mxu1 %v3096_v9  ;;  %v3181_v51 = vld [vmem:[#allocation7 + $0x270] ss:$24 sps:$4 sm:$0xff]   ;;  %v153_v9 = vlaneseq }
  0x84   :  { %574 = vmatprep.subr.bf16.mxu1 %v3097_v10 }
  0x85   :  { %v3670_v10 = vshrl.u32 %v153_v9, 7  ;;  %v3238_v9 = vld [vmem:[#allocation7 + $0x428] ss:$24 sps:$4 sm:$0xff]  }
  0x86   :  { %532 = vmatpush1.bf16.msra.mxu0 %v3051_v54  ;;  %v3160_v54 = vld [vmem:[#allocation7 + $0x1b8] ss:$24 sps:$4 sm:$0xff]  }
  0x87   :  { %533 = vmatprep.subr.bf16.mxu0 %v3052_v55  ;;  %575 = vmatpush1.bf16.msra.mxu1 %v3099_v13  ;;  %v3168_v55 = vld [vmem:[#allocation7 + $0x1ec] ss:$24 sps:$4 sm:$0xff]   ;;  %v159_v13 = vsub.s32 1, %v3670_v10 }
  0x88   :  { %576 = vmatprep.subr.bf16.mxu1 %v3100_v14 }
  0x8a   :  { %534 = vmatpush1.bf16.msra.mxu0 %v3054_v58  ;;  %v3172_v58 = vld [vmem:[#allocation7 + $0x218] ss:$24 sps:$4 sm:$0xff]  }
  0x8b   :  { %1785 = vmatprep.subr.bf16.mxu0 %v3105_v59  ;;  %577 = vmatpush1.bf16.msra.mxu1 %v3102_v16  ;;  %v3180_v59 = vld [vmem:[#allocation7 + $0x24c] ss:$24 sps:$4 sm:$0xff]  }
  0x8c   :  { %1871 = vmatprep.subr.bf16.mxu1 %v3108_v17 }
  0x8d   :  { %536 = vmatmul.mubr.bf16.vlgmr.msra.gmra.mrb[0].mxu0 %v2596_v61 }
  0x8e   :  { %1786 = vmatpush1.bf16.msra.mxu0 %v3103_v63  ;;  %579 = vmatmul.mubr.bf16.vlgmr.msra.gmra.mrb[0].mxu1 %v2596_v61  ;;  %v3186_v61 = vld [vmem:[#allocation7 + $0x27c] ss:$24 sps:$4 sm:$0xff]  }
  0x8f   :  { %1787 = vmatprep.subr.bf16.mxu0 %v3111_v0  ;;  %1872 = vmatpush1.bf16.msra.mxu1 %v3106_v21  ;;  %v3189_v63 = vld [vmem:[#allocation7 + $0x2a4] ss:$24 sps:$4 sm:$0xff]  }
  0x90   :  { %1873 = vmatprep.subr.bf16.mxu1 %v3114_v22  ;;  %v3192_v0 = vld [vmem:[#allocation7 + $0x2ac] ss:$24 sps:$4 sm:$0xff]  }
  0x92   :  { %1788 = vmatpush1.bf16.msra.mxu0 %v3109_v3  ;;  %v3195_v3 = vld [vmem:[#allocation7 + $0x2d4] ss:$24 sps:$4 sm:$0xff]  }
  0x93   :  { %1789 = vmatprep.subr.bf16.mxu0 %v3117_v4  ;;  %1874 = vmatpush1.bf16.msra.mxu1 %v3112_v25  ;;  %v3198_v4 = vld [vmem:[#allocation7 + $0x2dc] ss:$24 sps:$4 sm:$0xff]  }
  0x94   :  { %1875 = vmatprep.subr.bf16.mxu1 %v3120_v26 }
  0x96   :  { %1790 = vmatpush1.bf16.msra.mxu0 %v3115_v7  ;;  %v3201_v7 = vld [vmem:[#allocation7 + $0x304] ss:$24 sps:$4 sm:$0xff]  }
  0x97   :  { %1791 = vmatprep.subr.bf16.mxu0 %v3123_v8  ;;  %1876 = vmatpush1.bf16.msra.mxu1 %v3118_v29  ;;  %v3204_v8 = vld [vmem:[#allocation7 + $0x30c] ss:$24 sps:$4 sm:$0xff]  }
  0x98   :  { %1877 = vmatprep.subr.bf16.mxu1 %v3126_v30  ;;  %v3199_v30 = vld [vmem:[#allocation7 + $0x300] ss:$24 sps:$4 sm:$0xff]  }
  0x9a   :  { %1792 = vmatpush1.bf16.msra.mxu0 %v3121_v11  ;;  %v155_v11 = vsub.s32 0, %v3670_v10 }
  0x9b   :  { %1793 = vmatprep.subr.bf16.mxu0 %v3129_v12  ;;  %1878 = vmatpush1.bf16.msra.mxu1 %v3124_v33  ;;  %v151_v12 = vld [vmem:[%s3748_s2] sm:$0xf]  ;;  %v3210_v33 = vld [vmem:[#allocation7 + $0x33c] ss:$24 sps:$4 sm:$0xff]  }
  0x9c   :  { %1879 = vmatprep.subr.bf16.mxu1 %v3132_v34  ;;  %v156_v14 = vrot.slane %v151_v12, %v155_v11  ;;  %v3205_v34 = vld [vmem:[#allocation7 + $0x330] ss:$24 sps:$4 sm:$0xff]  }
  0x9e   :  { %1794 = vmatpush1.bf16.msra.mxu0 %v3127_v15  ;;  %v160_v15 = vrot.slane %v151_v12, %v159_v13 }
  0x9f   :  { %1795 = vmatprep.subr.bf16.mxu0 %v3135_v18  ;;  %1880 = vmatpush1.bf16.msra.mxu1 %v3130_v37  ;;  %v3216_v37 = vld [vmem:[#allocation7 + $0x36c] ss:$24 sps:$4 sm:$0xff]  }
  0xa0   :  { %1881 = vmatprep.subr.bf16.mxu1 %v3138_v38  ;;  %v163_v38 = vsub.s32 2, %v3670_v10 }
  0xa2   :  { %1796 = vmatpush1.bf16.msra.mxu0 %v3133_v19 }
  0xa3   :  { %1797 = vmatprep.subr.bf16.mxu0 %v3141_v20  ;;  %1882 = vmatpush1.bf16.msra.mxu1 %v3136_v41  ;;  %v167_v41 = vsub.s32 3, %v3670_v10 }
  0xa4   :  { %1883 = vmatprep.subr.bf16.mxu1 %v3144_v42  ;;  %v3219_v42 = vld [vmem:[#allocation7 + $0x394] ss:$24 sps:$4 sm:$0xff]  }
  0xa6   :  { %1798 = vmatpush1.bf16.msra.mxu0 %v3139_v23 }
  0xa7   :  { %1799 = vmatprep.subr.bf16.mxu0 %v3147_v24  ;;  %1884 = vmatpush1.bf16.msra.mxu1 %v3142_v45  ;;  %v3217_v45 = vld [vmem:[#allocation7 + $0x390] ss:$24 sps:$4 sm:$0xff]  }
  0xa8   :  { %1885 = vmatprep.subr.bf16.mxu1 %v3150_v46  ;;  %v3220_v46 = vld [vmem:[#allocation7 + $0x398] ss:$24 sps:$4 sm:$0xff]  }
  0xaa   :  { %1800 = vmatpush1.bf16.msra.mxu0 %v3145_v27 }
  0xab   :  { %1801 = vmatprep.subr.bf16.mxu0 %v3153_v28  ;;  %1886 = vmatpush1.bf16.msra.mxu1 %v3148_v49  ;;  %v3228_v49 = vld [vmem:[#allocation7 + $0x3cc] ss:$24 sps:$4 sm:$0xff]  }
  0xac   :  { %1887 = vmatprep.subr.bf16.mxu1 %v3156_v50 }
  0xae   :  { %1802 = vmatpush1.bf16.msra.mxu0 %v3151_v31  ;;  %v3202_v31 = vld [vmem:[#allocation7 + $0x308] ss:$24 sps:$4 sm:$0xff]  }
  0xaf   :  { %1803 = vmatprep.subr.bf16.mxu0 %v3159_v32  ;;  %1888 = vmatpush1.bf16.msra.mxu1 %v3154_v52  ;;  %v3207_v32 = vld [vmem:[#allocation7 + $0x334] ss:$24 sps:$4 sm:$0xff]  }
  0xb0   :  { %1889 = vmatprep.subr.bf16.mxu1 %v3162_v53  ;;  %v3223_v53 = vld [vmem:[#allocation7 + $0x3c0] ss:$24 sps:$4 sm:$0xff]  }
  0xb2   :  { %1804 = vmatpush1.bf16.msra.mxu0 %v3157_v35  ;;  %v3208_v35 = vld [vmem:[#allocation7 + $0x338] ss:$24 sps:$4 sm:$0xff]  }
  0xb3   :  { %1805 = vmatprep.subr.bf16.mxu0 %v3165_v36  ;;  %1890 = vmatpush1.bf16.msra.mxu1 %v3160_v54  ;;  %v3213_v36 = vld [vmem:[#allocation7 + $0x364] ss:$24 sps:$4 sm:$0xff]   ;;  %v3226_v54 = vld [vmem:[#allocation7 + $0x3c8] ss:$24 sps:$4 sm:$0xff]  }
  0xb4   :  { %1891 = vmatprep.subr.bf16.mxu1 %v3168_v55 }
  0xb6   :  { %1806 = vmatpush1.bf16.msra.mxu0 %v3163_v39  ;;  %v3211_v39 = vld [vmem:[#allocation7 + $0x360] ss:$24 sps:$4 sm:$0xff]  }
  0xb7   :  { %1807 = vmatprep.subr.bf16.mxu0 %v3171_v40  ;;  %1892 = vmatpush1.bf16.msra.mxu1 %v3166_v56  ;;  %v3214_v40 = vld [vmem:[#allocation7 + $0x368] ss:$24 sps:$4 sm:$0xff]  }
  0xb8   :  { %1893 = vmatprep.subr.bf16.mxu1 %v3174_v57  ;;  %v3231_v57 = vld [vmem:[#allocation7 + $0x3f4] ss:$24 sps:$4 sm:$0xff]  }
  0xba   :  { %1808 = vmatpush1.bf16.msra.mxu0 %v3169_v43  ;;  %v3222_v43 = vld [vmem:[#allocation7 + $0x39c] ss:$24 sps:$4 sm:$0xff]  }
  0xbb   :  { %1809 = vmatprep.subr.bf16.mxu0 %v3177_v44  ;;  %1894 = vmatpush1.bf16.msra.mxu1 %v3172_v58  ;;  %v164_v44 = vrot.slane %v151_v12, %v163_v38  ;;  %v3234_v58 = vld [vmem:[#allocation7 + $0x3fc] ss:$24 sps:$4 sm:$0xff]  }
  0xbc   :  { %1895 = vmatprep.subr.bf16.mxu1 %v3180_v59 }
  0xbe   :  { %1810 = vmatpush1.bf16.msra.mxu0 %v3175_v47  ;;  %v168_v47 = vrot.slane %v151_v12, %v167_v41  ;;  %v3243_v12 = vld [vmem:[#allocation7 + $0x454] ss:$24 sps:$4 sm:$0xff]  }
  0xbf   :  { %1811 = vmatprep.subr.bf16.mxu0 %v3183_v48  ;;  %1896 = vmatpush1.bf16.msra.mxu1 %v3178_v60  ;;  %v3225_v48 = vld [vmem:[#allocation7 + $0x3c4] ss:$24 sps:$4 sm:$0xff]  }
  0xc0   :  { %1897 = vmatprep.subr.bf16.mxu1 %v3186_v61 }
  0xc2   :  { %1812 = vmatpush1.bf16.msra.mxu0 %v3181_v51 }
  0xc3   :  { %1898 = vmatpush1.bf16.msra.mxu1 %v3184_v62  ;;  %1813 = vmatprep.subr.bf16.mxu0 %v3189_v63 }
  0xc4   :  { %1899 = vmatprep.subr.bf16.mxu1 %v3192_v0 }
  0xc6   :  { %1814 = vmatpush1.bf16.msra.mxu0 %v3187_v1  ;;  %v3229_v1 = vld [vmem:[#allocation7 + $0x3f0] ss:$24 sps:$4 sm:$0xff]  }
  0xc7   :  { %1900 = vmatpush1.bf16.msra.mxu1 %v3190_v2  ;;  %1815 = vmatprep.subr.bf16.mxu0 %v3195_v3  ;;  %v3232_v2 = vld [vmem:[#allocation7 + $0x3f8] ss:$24 sps:$4 sm:$0xff]  }
  0xc8   :  { %1901 = vmatprep.subr.bf16.mxu1 %v3198_v4  ;;  %v3237_v4 = vld [vmem:[#allocation7 + $0x424] ss:$24 sps:$4 sm:$0xff]  }
  0xca   :  { %1816 = vmatpush1.bf16.msra.mxu0 %v3193_v5  ;;  %v3240_v5 = vld [vmem:[#allocation7 + $0x42c] ss:$24 sps:$4 sm:$0xff]  }
  0xcb   :  { %1902 = vmatpush1.bf16.msra.mxu1 %v3196_v6  ;;  %1828 = vmatprep.subr.bf16.mxu0 %v3201_v7 }
  0xcc   :  { %1914 = vmatprep.subr.bf16.mxu1 %v3204_v8  ;;  %v3235_v8 = vld [vmem:[#allocation7 + $0x420] ss:$24 sps:$4 sm:$0xff]  }
 0x160   :  { %v537_v16 = vpop.f32.mrb[0].mxu0 }
 0x161   :  { %v538_v17 = vadd.f32 %v537_v16, %v156_v14  ;;  %v539_v18 = vpop.f32.mrb[1].mxu0  ;;  %v580_v50 = vpop.f32.mrb[0].mxu1  ;;  %v3244_v16 = vld [vmem:[#allocation7 + $0x458] ss:$24 sps:$4 sm:$0xff]  }
 0x162   :  { %v540_v19 = vadd.f32 %v539_v18, %v160_v15  ;;  %v541_v20 = vpop.f32.mrb[2].mxu0  ;;  %v581_v51 = vadd.f32 %v580_v50, %v164_v44  ;;  %v582_v52 = vpop.f32.mrb[1].mxu1  ;;  %v3252_v18 = vld [vmem:[#allocation7 + $0x48c] ss:$24 sps:$4 sm:$0xff]   ;;  %v3294_v50 = vld [vmem:[#allocation7 + $0x5dc] ss:$24 sps:$4 sm:$0xff]  }
 0x163   :  { %v542_v21 = vadd.f32 %v541_v20, %v156_v14  ;;  %v543_v22 = vpop.f32.mrb[3].mxu0  ;;  %v589_v24 = vmax.f32 %v538_v17, 0.0  ;;  %v583_v55 = vadd.f32 %v582_v52, %v168_v47  ;;  %v584_v56 = vpop.f32.mrb[2].mxu1  ;;  %v3246_v14 = vld [vmem:[#allocation7 + $0x45c] ss:$24 sps:$4 sm:$0xff]  }
 0x164   :  { %v544_v23 = vadd.f32 %v543_v22, %v160_v15  ;;  %v590_v26 = vmax.f32 %v540_v19, 0.0  ;;  %v591_v59 = vmax.f32 %v581_v51, 0.0  ;;  %v585_v60 = vadd.f32 %v584_v56, %v164_v44  ;;  %v586_v61 = vpop.f32.mrb[3].mxu1  ;;  %v3241_v15 = vld [vmem:[#allocation7 + $0x450] ss:$24 sps:$4 sm:$0xff]   ;;  %v3391_v56 = vld [vmem:[#allocation8 + $0x40] sm:$0xff]  }
 0x165   :  { %v593_v25 = vmax.f32 %v542_v21, 0.0  ;;  %v592_v62 = vmax.f32 %v583_v55, 0.0  ;;  %v587_v63 = vadd.f32 %v586_v61, %v168_v47  ;;  %v3249_v17 = vld [vmem:[#allocation7 + $0x484] ss:$24 sps:$4 sm:$0xff]   ;;  %v3247_v19 = vld [vmem:[#allocation7 + $0x480] ss:$24 sps:$4 sm:$0xff]  }
 0x166   :  { %v594_v27 = vmax.f32 %v544_v23, 0.0  ;;  %v595_v0 = vmax.f32 %v585_v60, 0.0  ;;  %v3250_v20 = vld [vmem:[#allocation7 + $0x488] ss:$24 sps:$4 sm:$0xff]   ;;  %v3255_v21 = vld [vmem:[#allocation7 + $0x4b4] ss:$24 sps:$4 sm:$0xff]  }
 0x167   :  { %v3681_v28 = vpack.c.bf16 %v593_v25, %v589_v24  ;;  %v596_v3 = vmax.f32 %v587_v63, 0.0  ;;  %v3258_v22 = vld [vmem:[#allocation7 + $0x4bc] ss:$24 sps:$4 sm:$0xff]   ;;  %v3253_v23 = vld [vmem:[#allocation7 + $0x4b0] ss:$24 sps:$4 sm:$0xff]  }
 0x168   :  { %v3683_v29 = vpack.c.bf16 %v594_v27, %v590_v26  ;;  %v3695_v6 = vpack.c.bf16 %v595_v0, %v591_v59  ;;  %v3256_v24 = vld [vmem:[#allocation7 + $0x4b8] ss:$24 sps:$4 sm:$0xff]   ;;  %v3261_v25 = vld [vmem:[#allocation7 + $0x4e4] ss:$24 sps:$4 sm:$0xff]   ;;  %v3303_v60 = vld [vmem:[#allocation7 + $0x74] ss:$24 sps:$4 sm:$0xff]  }
 0x169   :  { %v3697_v7 = vpack.c.bf16 %v596_v3, %v592_v62  ;;  %v3264_v26 = vld [vmem:[#allocation7 + $0x4ec] ss:$24 sps:$4 sm:$0xff]   ;;  %v3259_v27 = vld [vmem:[#allocation7 + $0x4e0] ss:$24 sps:$4 sm:$0xff]   ;;  %v3289_v51 = vld [vmem:[#allocation7 + $0x5d0] ss:$24 sps:$4 sm:$0xff]  }
 0x16a   :  { %1817 = vmatprep.mubr.bf16.mxu0 %v3683_v29  ;;  %1903 = vmatprep.mubr.bf16.mxu1 %v3683_v29  ;;  %v3280_v44 = vld [vmem:[#allocation7 + $0x578] ss:$24 sps:$4 sm:$0xff]   ;;  %v3300_v55 = vld [vmem:[#allocation7 + $0x44] ss:$24 sps:$4 sm:$0xff]   ;;  %v3394_v61 = vld [vmem:[#allocation8 + $0x8] sm:$0xff]  }
 0x16b   :  { %1818 = vmatmul.mubr.bf16.vlgmr.msra.gmra.mrb[4].mxu0 %v3681_v28  ;;  %1904 = vmatmul.mubr.bf16.vlgmr.msra.gmra.mrb[4].mxu1 %v3681_v28  ;;  %v3283_v47 = vld [vmem:[#allocation7 + $0x5a0] ss:$24 sps:$4 sm:$0xff]   ;;  %v3395_v62 = vld [vmem:[#allocation8 + $0x50] sm:$0xff]   ;;  %v3306_v0 = vld [vmem:[#allocation7 + $0xa4] ss:$24 sps:$4 sm:$0xff]  }
 0x16c   :  { %1829 = vmatpush1.bf16.msra.mxu0 %v3199_v30  ;;  %1915 = vmatpush1.bf16.msra.mxu1 %v3202_v31  ;;  %v3262_v30 = vld [vmem:[#allocation7 + $0x4e8] ss:$24 sps:$4 sm:$0xff]   ;;  %v3267_v31 = vld [vmem:[#allocation7 + $0x514] ss:$24 sps:$4 sm:$0xff]   ;;  %v3292_v52 = vld [vmem:[#allocation7 + $0x5d8] ss:$24 sps:$4 sm:$0xff]  }
 0x16d   :  { %1830 = vmatprep.subr.bf16.mxu0 %v3207_v32  ;;  %1916 = vmatprep.subr.bf16.mxu1 %v3210_v33  ;;  %v3270_v32 = vld [vmem:[#allocation7 + $0x51c] ss:$24 sps:$4 sm:$0xff]   ;;  %v3265_v33 = vld [vmem:[#allocation7 + $0x510] ss:$24 sps:$4 sm:$0xff]   ;;  %v3298_v59 = vld [vmem:[#allocation7 + $0x40] ss:$24 sps:$4 sm:$0xff]  }
 0x16e   :  { %1860 = vmatprep.mubr.bf16.mxu0 %v3697_v7  ;;  %1946 = vmatprep.mubr.bf16.mxu1 %v3697_v7  ;;  %v3301_v63 = vld [vmem:[#allocation7 + $0x70] ss:$24 sps:$4 sm:$0xff]   ;;  %v3304_v3 = vld [vmem:[#allocation7 + $0xa0] ss:$24 sps:$4 sm:$0xff]  }
 0x170   :  { %1831 = vmatpush1.bf16.msra.mxu0 %v3205_v34  ;;  %1917 = vmatpush1.bf16.msra.mxu1 %v3208_v35  ;;  %v3268_v34 = vld [vmem:[#allocation7 + $0x518] ss:$24 sps:$4 sm:$0xff]   ;;  %v3273_v35 = vld [vmem:[#allocation7 + $0x544] ss:$24 sps:$4 sm:$0xff]  }
 0x171   :  { %1832 = vmatprep.subr.bf16.mxu0 %v3213_v36  ;;  %1918 = vmatprep.subr.bf16.mxu1 %v3216_v37  ;;  %v3276_v36 = vld [vmem:[#allocation7 + $0x54c] ss:$24 sps:$4 sm:$0xff]   ;;  %v3271_v37 = vld [vmem:[#allocation7 + $0x540] ss:$24 sps:$4 sm:$0xff]  }
 0x174   :  { %1833 = vmatpush1.bf16.msra.mxu0 %v3211_v39  ;;  %1919 = vmatpush1.bf16.msra.mxu1 %v3214_v40  ;;  %v3274_v39 = vld [vmem:[#allocation7 + $0x548] ss:$24 sps:$4 sm:$0xff]   ;;  %v3279_v40 = vld [vmem:[#allocation7 + $0x574] ss:$24 sps:$4 sm:$0xff]  }
 0x175   :  { %1834 = vmatprep.subr.bf16.mxu0 %v3219_v42  ;;  %1920 = vmatprep.subr.bf16.mxu1 %v3222_v43  ;;  %v3282_v42 = vld [vmem:[#allocation7 + $0x57c] ss:$24 sps:$4 sm:$0xff]   ;;  %v3277_v43 = vld [vmem:[#allocation7 + $0x570] ss:$24 sps:$4 sm:$0xff]  }
 0x178   :  { %1835 = vmatpush1.bf16.msra.mxu0 %v3217_v45  ;;  %1921 = vmatpush1.bf16.msra.mxu1 %v3220_v46  ;;  %v3285_v45 = vld [vmem:[#allocation7 + $0x5a4] ss:$24 sps:$4 sm:$0xff]  }
 0x179   :  { %1836 = vmatprep.subr.bf16.mxu0 %v3225_v48  ;;  %1922 = vmatprep.subr.bf16.mxu1 %v3228_v49  ;;  %v3288_v46 = vld [vmem:[#allocation7 + $0x5ac] ss:$24 sps:$4 sm:$0xff]   ;;  %v3286_v48 = vld [vmem:[#allocation7 + $0x5a8] ss:$24 sps:$4 sm:$0xff]  }
 0x17a   :  { %v3291_v49 = vld [vmem:[#allocation7 + $0x5d4] ss:$24 sps:$4 sm:$0xff]  }
 0x17c   :  { %1837 = vmatpush1.bf16.msra.mxu0 %v3223_v53  ;;  %1923 = vmatpush1.bf16.msra.mxu1 %v3226_v54  ;;  %v3297_v53 = vld [vmem:[#allocation7 + $0x14] ss:$24 sps:$4 sm:$0xff]   ;;  %v3295_v54 = vld [vmem:[#allocation7 + $0x10] ss:$24 sps:$4 sm:$0xff]  }
 0x17d   :  { %1838 = vmatprep.subr.bf16.mxu0 %v3231_v57  ;;  %1924 = vmatprep.subr.bf16.mxu1 %v3234_v58  ;;  %v3392_v57 = vld [vmem:[#allocation8] sm:$0xff]   ;;  %v3393_v58 = vld [vmem:[#allocation8 + $0x48] sm:$0xff]  }
 0x180   :  { %1839 = vmatpush1.bf16.msra.mxu0 %v3229_v1  ;;  %1925 = vmatpush1.bf16.msra.mxu1 %v3232_v2  ;;  %v3396_v1 = vld [vmem:[#allocation8 + $0x10] sm:$0xff]   ;;  %v3397_v2 = vld [vmem:[#allocation8 + $0x58] sm:$0xff]  }
 0x181   :  { %1840 = vmatprep.subr.bf16.mxu0 %v3237_v4  ;;  %1926 = vmatprep.subr.bf16.mxu1 %v3240_v5  ;;  %v3398_v4 = vld [vmem:[#allocation8 + $0x18] sm:$0xff]   ;;  %v3399_v5 = vld [vmem:[#allocation8 + $0x60] sm:$0xff]  }
 0x184   :  { %1841 = vmatpush1.bf16.msra.mxu0 %v3235_v8  ;;  %1927 = vmatpush1.bf16.msra.mxu1 %v3238_v9  ;;  %v3307_v8 = vld [vmem:[#allocation7 + $0xd0] ss:$24 sps:$4 sm:$0xff]   ;;  %v3312_v9 = vld [vmem:[#allocation7 + $0x104] ss:$24 sps:$4 sm:$0xff]  }
 0x185   :  { %1842 = vmatprep.subr.bf16.mxu0 %v3243_v12  ;;  %1928 = vmatprep.subr.bf16.mxu1 %v3246_v14  ;;  %v3400_v12 = vld [vmem:[#allocation8 + $0x20] sm:$0xff]   ;;  %v3401_v14 = vld [vmem:[#allocation8 + $0x68] sm:$0xff]  }
 0x188   :  { %1843 = vmatpush1.bf16.msra.mxu0 %v3241_v15  ;;  %1929 = vmatpush1.bf16.msra.mxu1 %v3244_v16  ;;  %v3310_v15 = vld [vmem:[#allocation7 + $0x100] ss:$24 sps:$4 sm:$0xff]   ;;  %v3315_v16 = vld [vmem:[#allocation7 + $0x134] ss:$24 sps:$4 sm:$0xff]  }
 0x189   :  { %1844 = vmatprep.subr.bf16.mxu0 %v3249_v17  ;;  %1930 = vmatprep.subr.bf16.mxu1 %v3252_v18  ;;  %v3402_v17 = vld [vmem:[#allocation8 + $0x28] sm:$0xff]  }
 0x18a   :  { %v3313_v18 = vld [vmem:[#allocation7 + $0x130] ss:$24 sps:$4 sm:$0xff]  }
 0x18c   :  { %1845 = vmatpush1.bf16.msra.mxu0 %v3247_v19  ;;  %1931 = vmatpush1.bf16.msra.mxu1 %v3250_v20  ;;  %v3318_v19 = vld [vmem:[#allocation7 + $0x164] ss:$24 sps:$4 sm:$0xff]   ;;  %v3316_v20 = vld [vmem:[#allocation7 + $0x160] ss:$24 sps:$4 sm:$0xff]  }
 0x18d   :  { %1846 = vmatprep.subr.bf16.mxu0 %v3255_v21  ;;  %1932 = vmatprep.subr.bf16.mxu1 %v3258_v22  ;;  %v3321_v21 = vld [vmem:[#allocation7 + $0x194] ss:$24 sps:$4 sm:$0xff]   ;;  %v3319_v22 = vld [vmem:[#allocation7 + $0x190] ss:$24 sps:$4 sm:$0xff]  }
 0x190   :  { %1847 = vmatpush1.bf16.msra.mxu0 %v3253_v23  ;;  %1933 = vmatpush1.bf16.msra.mxu1 %v3256_v24  ;;  %v3324_v23 = vld [vmem:[#allocation7 + $0x1c4] ss:$24 sps:$4 sm:$0xff]   ;;  %v3322_v24 = vld [vmem:[#allocation7 + $0x1c0] ss:$24 sps:$4 sm:$0xff]  }
 0x191   :  { %1848 = vmatprep.subr.bf16.mxu0 %v3261_v25  ;;  %1934 = vmatprep.subr.bf16.mxu1 %v3264_v26  ;;  %v3327_v25 = vld [vmem:[#allocation7 + $0x1f4] ss:$24 sps:$4 sm:$0xff]   ;;  %v3325_v26 = vld [vmem:[#allocation7 + $0x1f0] ss:$24 sps:$4 sm:$0xff]  }
 0x194   :  { %1849 = vmatpush1.bf16.msra.mxu0 %v3259_v27  ;;  %1935 = vmatpush1.bf16.msra.mxu1 %v3262_v30  ;;  %v3330_v27 = vld [vmem:[#allocation7 + $0x224] ss:$24 sps:$4 sm:$0xff]   ;;  %v3328_v30 = vld [vmem:[#allocation7 + $0x220] ss:$24 sps:$4 sm:$0xff]  }
 0x195   :  { %1850 = vmatprep.subr.bf16.mxu0 %v3267_v31  ;;  %1936 = vmatprep.subr.bf16.mxu1 %v3270_v32  ;;  %v3333_v31 = vld [vmem:[#allocation7 + $0x254] ss:$24 sps:$4 sm:$0xff]   ;;  %v3331_v32 = vld [vmem:[#allocation7 + $0x250] ss:$24 sps:$4 sm:$0xff]  }
 0x198   :  { %1851 = vmatpush1.bf16.msra.mxu0 %v3265_v33  ;;  %1937 = vmatpush1.bf16.msra.mxu1 %v3268_v34  ;;  %v3336_v33 = vld [vmem:[#allocation7 + $0x284] ss:$24 sps:$4 sm:$0xff]   ;;  %v3334_v34 = vld [vmem:[#allocation7 + $0x280] ss:$24 sps:$4 sm:$0xff]  }
 0x199   :  { %1852 = vmatprep.subr.bf16.mxu0 %v3273_v35  ;;  %1938 = vmatprep.subr.bf16.mxu1 %v3276_v36  ;;  %v3339_v35 = vld [vmem:[#allocation7 + $0x2b4] ss:$24 sps:$4 sm:$0xff]   ;;  %v3337_v36 = vld [vmem:[#allocation7 + $0x2b0] ss:$24 sps:$4 sm:$0xff]  }
 0x19c   :  { %1853 = vmatpush1.bf16.msra.mxu0 %v3271_v37  ;;  %1939 = vmatpush1.bf16.msra.mxu1 %v3274_v39  ;;  %v3342_v37 = vld [vmem:[#allocation7 + $0x2e4] ss:$24 sps:$4 sm:$0xff]   ;;  %v3340_v39 = vld [vmem:[#allocation7 + $0x2e0] ss:$24 sps:$4 sm:$0xff]  }
 0x19d   :  { %1854 = vmatprep.subr.bf16.mxu0 %v3279_v40  ;;  %1940 = vmatprep.subr.bf16.mxu1 %v3282_v42  ;;  %v3345_v40 = vld [vmem:[#allocation7 + $0x314] ss:$24 sps:$4 sm:$0xff]   ;;  %v3343_v42 = vld [vmem:[#allocation7 + $0x310] ss:$24 sps:$4 sm:$0xff]  }
 0x1a0   :  { %1855 = vmatpush1.bf16.msra.mxu0 %v3277_v43  ;;  %1941 = vmatpush1.bf16.msra.mxu1 %v3280_v44  ;;  %v3348_v43 = vld [vmem:[#allocation7 + $0x344] ss:$24 sps:$4 sm:$0xff]   ;;  %v3346_v44 = vld [vmem:[#allocation7 + $0x340] ss:$24 sps:$4 sm:$0xff]  }
 0x1a1   :  { %1856 = vmatprep.subr.bf16.mxu0 %v3285_v45  ;;  %1942 = vmatprep.subr.bf16.mxu1 %v3288_v46  ;;  %v3351_v45 = vld [vmem:[#allocation7 + $0x374] ss:$24 sps:$4 sm:$0xff]   ;;  %v3349_v46 = vld [vmem:[#allocation7 + $0x370] ss:$24 sps:$4 sm:$0xff]  }
 0x1a4   :  { %1857 = vmatpush1.bf16.msra.mxu0 %v3283_v47  ;;  %1943 = vmatpush1.bf16.msra.mxu1 %v3286_v48  ;;  %v3354_v47 = vld [vmem:[#allocation7 + $0x3a4] ss:$24 sps:$4 sm:$0xff]   ;;  %v3352_v48 = vld [vmem:[#allocation7 + $0x3a0] ss:$24 sps:$4 sm:$0xff]  }
 0x1a5   :  { %1858 = vmatprep.subr.bf16.mxu0 %v3291_v49  ;;  %1944 = vmatprep.subr.bf16.mxu1 %v3294_v50  ;;  %v3357_v49 = vld [vmem:[#allocation7 + $0x3d4] ss:$24 sps:$4 sm:$0xff]   ;;  %v3355_v50 = vld [vmem:[#allocation7 + $0x3d0] ss:$24 sps:$4 sm:$0xff]  }
 0x1a8   :  { %1859 = vmatpush1.bf16.msra.mxu0 %v3289_v51  ;;  %1945 = vmatpush1.bf16.msra.mxu1 %v3292_v52  ;;  %v3360_v51 = vld [vmem:[#allocation7 + $0x404] ss:$24 sps:$4 sm:$0xff]   ;;  %v3363_v52 = vld [vmem:[#allocation7 + $0x434] ss:$24 sps:$4 sm:$0xff]  }
 0x1a9   :  { %1957 = vmatprep.subr.bf16.mxu0 %v3297_v53  ;;  %2903 = vmatprep.subr.bf16.mxu1 %v3391_v56  ;;  %v3404_v53 = vld [vmem:[#allocation8 + $0x30] sm:$0xff]   ;;  %v3405_v56 = vld [vmem:[#allocation8 + $0x78] sm:$0xff]  }
 0x1ab   :  { %1861 = vmatmul.mubr.bf16.vlgmr.msra.gmra.mrb[4].mxu0 %v3695_v6  ;;  %1947 = vmatmul.mubr.bf16.vlgmr.msra.gmra.mrb[4].mxu1 %v3695_v6 }
 0x1ac   :  { %1958 = vmatpush1.bf16.msra.mxu0 %v3295_v54  ;;  %1989 = vmatprep.mubr.bf16.mxu0 %v3683_v29  ;;  %v3309_v29 = vld [vmem:[#allocation7 + $0xd4] ss:$24 sps:$4 sm:$0xff]   ;;  %v3361_v54 = vld [vmem:[#allocation7 + $0x430] ss:$24 sps:$4 sm:$0xff]  }
 0x1ad   :  { %1959 = vmatprep.subr.bf16.mxu0 %v3300_v55  ;;  %2904 = vmatpush3.bf16.msra.mxu1 %v3392_v57  ;;  %v3366_v55 = vld [vmem:[#allocation7 + $0x464] ss:$24 sps:$4 sm:$0xff]  }
 0x1ae   :  { %2905 = vmatprep.subr.bf16.mxu1 %v3393_v58  ;;  %v3406_v57 = vld [vmem:[#allocation8 + $0x38] sm:$0xff]  }
 0x1af   :  { %v3364_v58 = vld [vmem:[#allocation7 + $0x460] ss:$24 sps:$4 sm:$0xff]  }
 0x1b0   :  { %1960 = vmatpush1.bf16.msra.mxu0 %v3298_v59  ;;  %v3369_v59 = vld [vmem:[#allocation7 + $0x494] ss:$24 sps:$4 sm:$0xff]  }
 0x1b1   :  { %1961 = vmatprep.subr.bf16.mxu0 %v3303_v60  ;;  %2906 = vmatpush3.bf16.msra.mxu1 %v3394_v61  ;;  %v3407_v60 = vld [vmem:[#allocation8 + $0xc0] sm:$0xff]   ;;  %v3367_v61 = vld [vmem:[#allocation7 + $0x490] ss:$24 sps:$4 sm:$0xff]  }
 0x1b2   :  { %2907 = vmatprep.subr.bf16.mxu1 %v3395_v62  ;;  %v3372_v62 = vld [vmem:[#allocation7 + $0x4c4] ss:$24 sps:$4 sm:$0xff]  }
 0x1b4   :  { %1962 = vmatpush1.bf16.msra.mxu0 %v3301_v63  ;;  %v3370_v63 = vld [vmem:[#allocation7 + $0x4c0] ss:$24 sps:$4 sm:$0xff]  }
 0x1b5   :  { %1963 = vmatprep.subr.bf16.mxu0 %v3306_v0  ;;  %2908 = vmatpush3.bf16.msra.mxu1 %v3396_v1  ;;  %v3375_v0 = vld [vmem:[#allocation7 + $0x4f4] ss:$24 sps:$4 sm:$0xff]   ;;  %v3373_v1 = vld [vmem:[#allocation7 + $0x4f0] ss:$24 sps:$4 sm:$0xff]  }
 0x1b6   :  { %2909 = vmatprep.subr.bf16.mxu1 %v3397_v2  ;;  %v3378_v2 = vld [vmem:[#allocation7 + $0x524] ss:$24 sps:$4 sm:$0xff]  }
 0x1b8   :  { %1964 = vmatpush1.bf16.msra.mxu0 %v3304_v3  ;;  %v3376_v3 = vld [vmem:[#allocation7 + $0x520] ss:$24 sps:$4 sm:$0xff]  }
 0x1b9   :  { %1965 = vmatprep.subr.bf16.mxu0 %v3309_v29  ;;  %2910 = vmatpush3.bf16.msra.mxu1 %v3398_v4  ;;  %v3381_v29 = vld [vmem:[#allocation7 + $0x554] ss:$24 sps:$4 sm:$0xff]   ;;  %v3379_v4 = vld [vmem:[#allocation7 + $0x550] ss:$24 sps:$4 sm:$0xff]  }
 0x1ba   :  { %2911 = vmatprep.subr.bf16.mxu1 %v3399_v5  ;;  %v3384_v5 = vld [vmem:[#allocation7 + $0x584] ss:$24 sps:$4 sm:$0xff]  }
 0x1bc   :  { %1966 = vmatpush1.bf16.msra.mxu0 %v3307_v8  ;;  %v3382_v8 = vld [vmem:[#allocation7 + $0x580] ss:$24 sps:$4 sm:$0xff]  }
 0x1bd   :  { %1967 = vmatprep.subr.bf16.mxu0 %v3312_v9  ;;  %2912 = vmatpush3.bf16.msra.mxu1 %v3400_v12  ;;  %v3387_v9 = vld [vmem:[#allocation7 + $0x5b4] ss:$24 sps:$4 sm:$0xff]   ;;  %v3385_v12 = vld [vmem:[#allocation7 + $0x5b0] ss:$24 sps:$4 sm:$0xff]  }
 0x1be   :  { %2913 = vmatprep.subr.bf16.mxu1 %v3401_v14  ;;  %v3390_v14 = vld [vmem:[#allocation7 + $0x5e4] ss:$24 sps:$4 sm:$0xff]  }
 0x1c0   :  { %1968 = vmatpush1.bf16.msra.mxu0 %v3310_v15  ;;  %v3388_v15 = vld [vmem:[#allocation7 + $0x5e0] ss:$24 sps:$4 sm:$0xff]  }
 0x1c1   :  { %1969 = vmatprep.subr.bf16.mxu0 %v3315_v16  ;;  %2914 = vmatpush3.bf16.msra.mxu1 %v3402_v17  ;;  %v3710_v16 = vld [vmem:[%s3750_s4] sm:$0x3f] }
 0x1c2   :  { %v798_v17 = vrot.slane %v3710_v16, %v155_v11 }
 0x1c4   :  { %1970 = vmatpush1.bf16.msra.mxu0 %v3313_v18  ;;  %v806_v18 = vrot.slane %v3710_v16, %v163_v38 }
 0x1c5   :  { %1971 = vmatprep.subr.bf16.mxu0 %v3318_v19  ;;  %v802_v19 = vrot.slane %v3710_v16, %v159_v13 }
 0x1c8   :  { %1972 = vmatpush1.bf16.msra.mxu0 %v3316_v20 }
 0x1c9   :  { %1973 = vmatprep.subr.bf16.mxu0 %v3321_v21 }
 0x1cc   :  { %1974 = vmatpush1.bf16.msra.mxu0 %v3319_v22 }
 0x1cd   :  { %1975 = vmatprep.subr.bf16.mxu0 %v3324_v23 }
 0x1d0   :  { %1976 = vmatpush1.bf16.msra.mxu0 %v3322_v24 }
 0x1d1   :  { %1977 = vmatprep.subr.bf16.mxu0 %v3327_v25 }
 0x1d4   :  { %1978 = vmatpush1.bf16.msra.mxu0 %v3325_v26 }
 0x1d5   :  { %1979 = vmatprep.subr.bf16.mxu0 %v3330_v27 }
 0x1d8   :  { %1980 = vmatpush1.bf16.msra.mxu0 %v3328_v30 }
 0x1d9   :  { %1981 = vmatprep.subr.bf16.mxu0 %v3333_v31 }
 0x1dc   :  { %1982 = vmatpush1.bf16.msra.mxu0 %v3331_v32 }
 0x1dd   :  { %1983 = vmatprep.subr.bf16.mxu0 %v3336_v33 }
 0x1e0   :  { %1984 = vmatpush1.bf16.msra.mxu0 %v3334_v34 }
 0x1e1   :  { %1985 = vmatprep.subr.bf16.mxu0 %v3339_v35 }
 0x1e4   :  { %1986 = vmatpush1.bf16.msra.mxu0 %v3337_v36 }
 0x1e5   :  { %1987 = vmatprep.subr.bf16.mxu0 %v3342_v37 }
 0x1e8   :  { %1988 = vmatpush1.bf16.msra.mxu0 %v3340_v39 }
 0x1e9   :  { %2000 = vmatprep.subr.bf16.mxu0 %v3345_v40 }
 0x1eb   :  { %1990 = vmatmul.mubr.bf16.vlgmr.msra.gmra.mrb[8].mxu0 %v3681_v28  ;;  %v3358_v28 = vld [vmem:[#allocation7 + $0x400] ss:$24 sps:$4 sm:$0xff]  }
 0x1ec   :  { %2001 = vmatpush1.bf16.msra.mxu0 %v3343_v42  ;;  %2032 = vmatprep.mubr.bf16.mxu0 %v3697_v7  ;;  %v3403_v7 = vld [vmem:[#allocation8 + $0x70] sm:$0xff]  }
 0x1ed   :  { %2002 = vmatprep.subr.bf16.mxu0 %v3348_v43  ;;  %2915 = vmatprep.subr.bf16.mxu1 %v3403_v7  ;;  %v3414_v7 = vld [vmem:[#allocation8 + $0x98] sm:$0xff]  }
 0x1ee   :  { %2916 = vmatpush3.bf16.msra.mxu1 %v3404_v53  ;;  %v3415_v53 = vld [vmem:[#allocation8 + $0xe0] sm:$0xff]  }
 0x1ef   :  { %2917 = vmatprep.subr.bf16.mxu1 %v3405_v56  ;;  %v3418_v56 = vld [vmem:[#allocation8 + $0xa8] sm:$0xff]  }
 0x1f0   :  { %2003 = vmatpush1.bf16.msra.mxu0 %v3346_v44 }
 0x1f1   :  { %2004 = vmatprep.subr.bf16.mxu0 %v3351_v45 }
 0x1f2   :  { %2918 = vmatpush3.bf16.msra.mxu1 %v3406_v57  ;;  %v3419_v57 = vld [vmem:[#allocation8 + $0xf0] sm:$0xff]  }
 0x1f3   :  { %2925 = vmatprep.subr.bf16.mxu1 %v3407_v60  ;;  %v3422_v60 = vld [vmem:[#allocation8 + $0xb8] sm:$0xff]  }
 0x1f4   :  { %2005 = vmatpush1.bf16.msra.mxu0 %v3349_v46 }
 0x1f5   :  { %2006 = vmatprep.subr.bf16.mxu0 %v3354_v47 }
 0x1f8   :  { %2007 = vmatpush1.bf16.msra.mxu0 %v3352_v48  ;;  %v3408_v48 = vld [vmem:[#allocation8 + $0x80] sm:$0xff]  }
 0x1f9   :  { %2008 = vmatprep.subr.bf16.mxu0 %v3357_v49  ;;  %v3409_v49 = vld [vmem:[#allocation8 + $0xc8] sm:$0xff]  }
 0x1fc   :  { %2009 = vmatpush1.bf16.msra.mxu0 %v3355_v50  ;;  %v3410_v50 = vld [vmem:[#allocation8 + $0x88] sm:$0xff]  }
 0x1fd   :  { %2010 = vmatprep.subr.bf16.mxu0 %v3360_v51  ;;  %v3411_v51 = vld [vmem:[#allocation8 + $0xd0] sm:$0xff]  }
 0x200   :  { %2011 = vmatpush1.bf16.msra.mxu0 %v3358_v28  ;;  %v3412_v28 = vld [vmem:[#allocation8 + $0x90] sm:$0xff]  }
 0x201   :  { %2012 = vmatprep.subr.bf16.mxu0 %v3363_v52  ;;  %v3413_v52 = vld [vmem:[#allocation8 + $0xd8] sm:$0xff]  }
 0x204   :  { %2013 = vmatpush1.bf16.msra.mxu0 %v3361_v54  ;;  %v3416_v54 = vld [vmem:[#allocation8 + $0xa0] sm:$0xff]  }
 0x205   :  { %2014 = vmatprep.subr.bf16.mxu0 %v3366_v55  ;;  %v3417_v55 = vld [vmem:[#allocation8 + $0xe8] sm:$0xff]  }
 0x208   :  { %2015 = vmatpush1.bf16.msra.mxu0 %v3364_v58  ;;  %v3420_v58 = vld [vmem:[#allocation8 + $0xb0] sm:$0xff]  }
 0x209   :  { %2016 = vmatprep.subr.bf16.mxu0 %v3369_v59  ;;  %v3421_v59 = vld [vmem:[#allocation8 + $0xf8] sm:$0xff]  }
 0x20c   :  { %2017 = vmatpush1.bf16.msra.mxu0 %v3367_v61  ;;  %v3423_v61 = vld [vmem:[#allocation8 + $0x140] sm:$0xff]  }
 0x20d   :  { %2018 = vmatprep.subr.bf16.mxu0 %v3372_v62  ;;  %v3424_v62 = vld [vmem:[#allocation8 + $0x100] sm:$0xff]  }
 0x210   :  { %2019 = vmatpush1.bf16.msra.mxu0 %v3370_v63  ;;  %v3425_v63 = vld [vmem:[#allocation8 + $0x148] sm:$0xff]  }
 0x211   :  { %2020 = vmatprep.subr.bf16.mxu0 %v3375_v0  ;;  %v3426_v0 = vld [vmem:[#allocation8 + $0x108] sm:$0xff]  }
 0x214   :  { %2021 = vmatpush1.bf16.msra.mxu0 %v3373_v1  ;;  %v3427_v1 = vld [vmem:[#allocation8 + $0x150] sm:$0xff]  }
 0x215   :  { %2022 = vmatprep.subr.bf16.mxu0 %v3378_v2  ;;  %v3428_v2 = vld [vmem:[#allocation8 + $0x110] sm:$0xff]  }
 0x218   :  { %2023 = vmatpush1.bf16.msra.mxu0 %v3376_v3  ;;  %v3429_v3 = vld [vmem:[#allocation8 + $0x158] sm:$0xff]  }
 0x219   :  { %2024 = vmatprep.subr.bf16.mxu0 %v3381_v29  ;;  %v3430_v29 = vld [vmem:[#allocation8 + $0x118] sm:$0xff]  }
 0x21c   :  { %2025 = vmatpush1.bf16.msra.mxu0 %v3379_v4  ;;  %v3431_v4 = vld [vmem:[#allocation8 + $0x160] sm:$0xff]  }
 0x21d   :  { %2026 = vmatprep.subr.bf16.mxu0 %v3384_v5  ;;  %v3432_v5 = vld [vmem:[#allocation8 + $0x120] sm:$0xff]  }
 0x220   :  { %2027 = vmatpush1.bf16.msra.mxu0 %v3382_v8  ;;  %v3433_v8 = vld [vmem:[#allocation8 + $0x168] sm:$0xff]  }
 0x221   :  { %2028 = vmatprep.subr.bf16.mxu0 %v3387_v9  ;;  %v3434_v9 = vld [vmem:[#allocation8 + $0x128] sm:$0xff]  }
 0x224   :  { %2029 = vmatpush1.bf16.msra.mxu0 %v3385_v12  ;;  %v3435_v12 = vld [vmem:[#allocation8 + $0x170] sm:$0xff]  }
 0x225   :  { %2030 = vmatprep.subr.bf16.mxu0 %v3390_v14  ;;  %v3436_v14 = vld [vmem:[#allocation8 + $0x130] sm:$0xff]  }
 0x228   :  { %2031 = vmatpush1.bf16.msra.mxu0 %v3388_v15  ;;  %v3437_v15 = vld [vmem:[#allocation8 + $0x178] sm:$0xff]  }
 0x22b   :  { %2033 = vmatmul.mubr.bf16.vlgmr.msra.gmra.mrb[8].mxu0 %v3695_v6  ;;  %v810_v6 = vrot.slane %v3710_v16, %v167_v41 }
 0x27e   :  { %v1862_v20 = vpop.f32.mrb[4].mxu0  ;;  %v1948_v21 = vpop.f32.mrb[4].mxu1 }
 0x27f   :  { %v2969_v22 = vadd.f32 %v1862_v20, %v798_v17  ;;  %v2973_v23 = vadd.f32 %v1948_v21, %v806_v18  ;;  %v1864_v24 = vpop.f32.mrb[5].mxu0  ;;  %v1950_v25 = vpop.f32.mrb[5].mxu1 }
 0x280   :  { %v2970_v26 = vadd.f32 %v1864_v24, %v802_v19  ;;  %v2974_v11 = vadd.f32 %v1950_v25, %v810_v6  ;;  %v1866_v27 = vpop.f32.mrb[6].mxu0  ;;  %v1952_v30 = vpop.f32.mrb[6].mxu1 }
 0x281   :  { %v2971_v31 = vadd.f32 %v1866_v27, %v798_v17  ;;  %v2975_v38 = vadd.f32 %v1952_v30, %v806_v18  ;;  %v1868_v32 = vpop.f32.mrb[7].mxu0  ;;  %v1954_v33 = vpop.f32.mrb[7].mxu1  ;;  %v2043_v35 = vmax.f32 %v2969_v22, 0.0  ;;  %v2045_v36 = vmax.f32 %v2973_v23, 0.0  ;;  %v3438_v17 = vld [vmem:[#allocation8 + $0x138] sm:$0xff]  }
 0x282   :  { %v2972_v34 = vadd.f32 %v1868_v32, %v802_v19  ;;  %v2976_v13 = vadd.f32 %v1954_v33, %v810_v6  ;;  %v2044_v39 = vmax.f32 %v2970_v26, 0.0  ;;  %v2046_v40 = vmax.f32 %v2974_v11, 0.0 }
 0x283   :  { %v2049_v37 = vmax.f32 %v2971_v31, 0.0  ;;  %v2051_v41 = vmax.f32 %v2975_v38, 0.0  ;;  %v813_v18 = vsub.s32 4, %v3670_v10  ;;  %v817_v19 = vsub.s32 5, %v3670_v10 }
 0x284   :  { %v2050_v42 = vmax.f32 %v2972_v34, 0.0  ;;  %v2052_v43 = vmax.f32 %v2976_v13, 0.0 }
 0x285   :  { %v2055_v44 = vpack.c.bf16 %v2049_v37, %v2043_v35  ;;  %v2057_v45 = vpack.c.bf16 %v2051_v41, %v2045_v36  ;;  %v814_v6 = vrot.slane %v3710_v16, %v813_v18  ;;  %v818_v20 = vrot.slane %v3710_v16, %v817_v19  ;;  %v2854_v41 = vld [vmem:[%s3752_s6] ss:$0 sm:$0xff]  ;;  %s3527_s6 = scalar_lea.vmem %s2583_s13, 256 }
 0x286   :  { %v2056_v46 = vpack.c.bf16 %v2050_v42, %v2044_v39  ;;  %v2058_v47 = vpack.c.bf16 %v2052_v43, %v2046_v40  ;;  %p3528_p4 = scmp.ne.s32.totalorder %s2583_s13, %s3527_s6  ;;  %p3533_p6 = scmp.lt.s32.totalorder %s3527_s6, %s3527_s6 }
 0x288   :  { %2484 = vmatprep.mubr.bf16.mxu1 %v2056_v46  ;;  %p3534_p7 = por %p3533_p6, %p3532_p5 }
 0x289   :  { %2485 = vmatmul.mubr.bf16.vlgmr.msra.gmra.mrb[8].mxu1 %v2055_v44 }
 0x28a   :  { %2926 = vmatpush3.bf16.msra.mxu1 %v3408_v48  ;;  %2525 = vmatprep.mubr.bf16.mxu1 %v2058_v47  ;;  %p3535_p8 = pnand %p3534_p7, %p3528_p4 }
 0x28b   :  { %2927 = vmatprep.subr.bf16.mxu1 %v3409_v49 }
 0x28e   :  { %2928 = vmatpush3.bf16.msra.mxu1 %v3410_v50 }
 0x28f   :  { %2929 = vmatprep.subr.bf16.mxu1 %v3411_v51 }
 0x292   :  { %2930 = vmatpush3.bf16.msra.mxu1 %v3412_v28 }
 0x293   :  { %2931 = vmatprep.subr.bf16.mxu1 %v3413_v52 }
 0x296   :  { %2932 = vmatpush3.bf16.msra.mxu1 %v3414_v7 }
 0x297   :  { %2933 = vmatprep.subr.bf16.mxu1 %v3415_v53 }
 0x29a   :  { %2934 = vmatpush3.bf16.msra.mxu1 %v3416_v54 }
 0x29b   :  { %2935 = vmatprep.subr.bf16.mxu1 %v3417_v55 }
 0x29e   :  { %2936 = vmatpush3.bf16.msra.mxu1 %v3418_v56 }
 0x29f   :  { %2937 = vmatprep.subr.bf16.mxu1 %v3419_v57 }
 0x2a2   :  { %2938 = vmatpush3.bf16.msra.mxu1 %v3420_v58 }
 0x2a3   :  { %2939 = vmatprep.subr.bf16.mxu1 %v3421_v59 }
 0x2a6   :  { %2940 = vmatpush3.bf16.msra.mxu1 %v3422_v60 }
 0x2a7   :  { %2947 = vmatprep.subr.bf16.mxu1 %v3423_v61 }
 0x2a9   :  { %2526 = vmatmul.mubr.bf16.vlgmr.msra.gmra.mrb[12].mxu1 %v2057_v45 }
 0x2aa   :  { %2948 = vmatpush3.bf16.msra.mxu1 %v3424_v62 }
 0x2ab   :  { %2949 = vmatprep.subr.bf16.mxu1 %v3425_v63 }
 0x2ae   :  { %2950 = vmatpush3.bf16.msra.mxu1 %v3426_v0 }
 0x2af   :  { %2951 = vmatprep.subr.bf16.mxu1 %v3427_v1 }
 0x2b2   :  { %2952 = vmatpush3.bf16.msra.mxu1 %v3428_v2 }
 0x2b3   :  { %2953 = vmatprep.subr.bf16.mxu1 %v3429_v3 }
 0x2b6   :  { %2954 = vmatpush3.bf16.msra.mxu1 %v3430_v29 }
 0x2b7   :  { %2955 = vmatprep.subr.bf16.mxu1 %v3431_v4 }
 0x2ba   :  { %2956 = vmatpush3.bf16.msra.mxu1 %v3432_v5 }
 0x2bb   :  { %2957 = vmatprep.subr.bf16.mxu1 %v3433_v8 }
 0x2be   :  { %2958 = vmatpush3.bf16.msra.mxu1 %v3434_v9 }
 0x2bf   :  { %2959 = vmatprep.subr.bf16.mxu1 %v3435_v12 }
 0x2c2   :  { %2960 = vmatpush3.bf16.msra.mxu1 %v3436_v14 }
 0x2c3   :  { %2961 = vmatprep.subr.bf16.mxu1 %v3437_v15 }
 0x2c6   :  { %2962 = vmatpush3.bf16.msra.mxu1 %v3438_v17 }
 0x2fe   :  { %v2034_v21 = vpop.f32.mrb[8].mxu0 }
 0x2ff   :  { %v2977_v22 = vadd.f32 %v2034_v21, %v814_v6  ;;  %v2036_v23 = vpop.f32.mrb[9].mxu0 }
 0x300   :  { %v2978_v24 = vadd.f32 %v2036_v23, %v818_v20  ;;  %v2038_v25 = vpop.f32.mrb[10].mxu0 }
 0x301   :  { %v2979_v26 = vadd.f32 %v2038_v25, %v814_v6  ;;  %v2040_v11 = vpop.f32.mrb[11].mxu0  ;;  %v2047_v30 = vmax.f32 %v2977_v22, 0.0 }
 0x302   :  { %v2980_v27 = vadd.f32 %v2040_v11, %v818_v20  ;;  %v2048_v38 = vmax.f32 %v2978_v24, 0.0 }
 0x303   :  { %v2053_v31 = vmax.f32 %v2979_v26, 0.0 }
 0x304   :  { %v2054_v32 = vmax.f32 %v2980_v27, 0.0 }
 0x305   :  { %v2059_v33 = vpack.c.bf16 %v2053_v31, %v2047_v30 }
 0x306   :  { %v2060_v34 = vpack.c.bf16 %v2054_v32, %v2048_v38 }
 0x308   :  { %2566 = vmatprep.mubr.bf16.mxu1 %v2060_v34 }
 0x309   :  { %2567 = vmatmul.mubr.bf16.vlgmr.msra.gmra.mrb[16].mxu1 %v2059_v33 }
 0x35c   :  { %v2919_v10 = vpop.f32.mrb[8].mxu1 }
 0x35d   :  { %v2920_v13 = vpop.f32.mrb[9].mxu1 }
 0x35e   :  { %v2921_v35 = vadd.f32 %v2920_v13, %v2919_v10  ;;  %v2922_v16 = vpop.f32.mrb[10].mxu1 }
 0x35f   :  { %v2923_v36 = vpop.f32.mrb[11].mxu1 }
 0x360   :  { %v2924_v37 = vadd.f32 %v2923_v36, %v2922_v16  ;;  %v2487_v42 = vadd.f32 %v2921_v35, %v2854_v41 }
 0x362   :  { %v2490_v46 = vadd.f32 %v2924_v37, %v2854_v41 }
 0x37c   :  { %v2941_v39 = vpop.f32.mrb[12].mxu1 }
 0x37d   :  { %v2942_v40 = vpop.f32.mrb[13].mxu1 }
 0x37e   :  { %v2943_v43 = vadd.f32 %v2942_v40, %v2941_v39  ;;  %v2944_v44 = vpop.f32.mrb[14].mxu1 }
 0x37f   :  { %v2945_v45 = vpop.f32.mrb[15].mxu1 }
 0x380   :  { %v2528_v47 = vadd.f32 %v2943_v43, %v2487_v42  ;;  %v2946_v48 = vadd.f32 %v2945_v45, %v2944_v44 }
 0x382   :  { %v2531_v49 = vadd.f32 %v2946_v48, %v2490_v46 }
 0x3dc   :  { %v2963_v50 = vpop.f32.mrb[16].mxu1 }
 0x3dd   :  { %v2964_v51 = vpop.f32.mrb[17].mxu1 }
 0x3de   :  { %v2965_v28 = vadd.f32 %v2964_v51, %v2963_v50  ;;  %v2966_v52 = vpop.f32.mrb[18].mxu1 }
 0x3df   :  { %v2967_v7 = vpop.f32.mrb[19].mxu1 }
 0x3e0   :  { %v2569_v53 = vadd.f32 %v2965_v28, %v2528_v47  ;;  %v2968_v54 = vadd.f32 %v2967_v7, %v2966_v52 }
 0x3e2   :  { %2575 = vst [vmem:[#allocation10] sm:$0xff] %v2569_v53  ;;  %v2572_v55 = vadd.f32 %v2968_v54, %v2531_v49 }
 0x3e4   :  { %2576 = vst [vmem:[#allocation10 + $0x8] sm:$0xff] %v2572_v55 }
 0x3e5   :  { %3538 = shalt.err (!%p3535_p8)
}
 0x3e6   :  { %s3539_s15 = scalar_lea.hbm %s3753_s7, 256 }
 0x3e7   :  { %p3540_p9 = scmp.ne.s32.totalorder %s3753_s7, %s3539_s15  ;;  %p3543_p10 = scmp.lt.u32.totalorder %s3539_s15, %s3753_s7 }
 0x3e9   :  { %p3545_p11 = pnand %p3543_p10, %p3540_p9 }
 0x3eb   :  { %3548 = shalt.err (!%p3545_p11)
}
 0x3ec   :  { %2588 = dma.vmem_to_hbm [thread:$0]  %s2583_s13, 256, %s3753_s7, [#allocation4], %s3561_s1, %s3561_s1, %s3562_s25  }
 0x3ed   :  { %3555 = dma.done.wait [#allocation4], 256  }
 0x3ee   :  { %3556 = vsyncadd [#allocation4], 4294967040 }
 0x3ef   :  { %2592 = vsyncpa [#allocation3], 1 }
 0x3f0   :  { %2593 = vsyncpa [#allocation6], 1 }
 0x3f1   :  { %2594 = vsyncpa [#allocation9], 1 }
 0x3f2   :  { %2595 = vsyncpa [#allocation4], 1 }

</bundles_post_ra>
